<compile_context>
chip_gen: v5e
topology: v5e:2x2
jax: 0.10.0
libtpu: 0.0.40
codegen_flags: <defaults>
</compile_context>

<pallas_src>
import math
from functools import partial

import jax
import jax.numpy as jnp
from jax import lax
from jax.experimental import pallas as pl
from jax.experimental.pallas import tpu as pltpu


def _round_up(x, m):
    return ((x + m - 1) // m) * m


def _device_profile():
    """Best-effort TPU-generation sniff; conservative fallback on failure."""
    kind = ""
    try:
        kind = jax.devices()[0].device_kind.lower()
    except Exception:
        pass
    is_v7 = "v7" in kind
    vmem_budget = (48 << 20) if is_v7 else (100 << 20)   # v7x: 64 MiB phys; v5e/v6e: 128 MiB
    vmem_cap = (56 << 20) if is_v7 else (112 << 20)
    num_tc = 2 if is_v7 else 1
    return vmem_budget, vmem_cap, num_tc


def _rnn_kernel(xproj_ref, wrec_t_ref, wo_ref, h0_ref, out_ref, h_scratch,
                *, dt, tb, unroll):
    """One (batch-block, time-block) grid step of the recurrence + fused readout.

    xproj_ref : (Tb, Bb, H) f32   precomputed dt*(x@wi + brec) + sqrt(dt)*noise_std*noise
    wrec_t_ref: (H, H)      bf16/f32   wrec.T (zero-padded), resident
    wo_ref    : (H, O)      bf16/f32   readout weight (zero-padded), resident
    h0_ref    : (1, H)      f32
    out_ref   : (Tb, Bb, O) f32   fused readout: tanh(h_t) @ wo
    h_scratch : (Bb, H)     f32   hidden-state carry across time blocks

    NOTE: correctness requires the TIME axis to be the innermost (fastest-varying)
    grid axis: the h_scratch carry plus the `pl.when(t_blk == 0)` init assume all nt
    time blocks of a given batch block run back-to-back before the batch block changes.
    """
    t_blk = pl.program_id(1)

    @pl.when(t_blk == 0)
    def _():
        # h starts as h0 (shape (1, H)) broadcast over the batch block.
        h_scratch[...] = jnp.broadcast_to(h0_ref[...], h_scratch.shape)

    # Weight-stationary across the Tb serial steps.
    w_rec = wrec_t_ref[...]
    w_out = wo_ref[...]
    one_minus_dt = jnp.float32(1.0 - dt)
    dt_f = jnp.float32(dt)

    # TODO(synk): drive the MXU explicitly (pltpu.matmul_push_rhs once per time block,
    # matmul_acc_lhs/matmul_pop per step) and interleave 2-4 batch sub-chunks per step
    # to hide MXU fill/drain latency for small batch blocks.
    def step(i, h):
        th = jnp.tanh(h)                                       # recurrence input
        rec = jnp.dot(th.astype(w_rec.dtype), w_rec,
                      preferred_element_type=jnp.float32)
        h_new = one_minus_dt * h + dt_f * rec + xproj_ref[i]
        th_new = jnp.tanh(h_new)                               # readout input
        out_ref[i] = jnp.dot(th_new.astype(w_out.dtype), w_out,
                             preferred_element_type=jnp.float32
                             ).astype(out_ref.dtype)
        return h_new        # carry only h: minimal loop-carried live state

    h_final = lax.fori_loop(0, tb, step, h_scratch[...], unroll=unroll)
    h_scratch[...] = h_final


def rnn_forward(x_bti, noise_bth, wi, wrec, wo, brec, h0, *,
                dt, noise_std, time_block=None, mxu_bf16=True,
                single_buffer_weights=True):
    """x_bti: (batch, seq, input_dim) -> output (batch, seq, output_dim)."""
    B, T, I = x_bti.shape
    H = wrec.shape[0]
    O = wo.shape[1]
    f32 = jnp.float32

    vmem_budget, vmem_cap, num_tc = _device_profile()

    # ---- Hoisted, fully parallel pre-pass: input projection + bias + scaled noise ----
    # TODO(synk): optionally generate the noise on-chip (pltpu.prng_seed +
    # pltpu.stateful_normal with sqrt(dt)*noise_std folded in) to drop the (B,T,H)
    # f32 HBM read; kept as an explicit input here for reproducibility.
    xproj = (dt * (jnp.einsum('bti,ih->bth', x_bti.astype(f32), wi.astype(f32))
                   + brec.astype(f32))
             + (math.sqrt(dt) * noise_std) * noise_bth.astype(f32))          # (B, T, H)

    # ---- Tile sizing (hardware-friendly padding) ----
    H_pad = _round_up(max(H, 128), 128)              # MXU / lane-dense
    O_pad = _round_up(max(O, 128), 128)              # lane-dense output stores
    B_pad = _round_up(max(B, 8), 8)                  # f32 sublane multiple
    Bb = min(B_pad, 128)
    B_pad = _round_up(B_pad, Bb)
    # v7x megacore: make sure both TensorCores get a batch block when possible.
    if num_tc > 1 and B_pad // Bb == 1 and B_pad % 16 == 0:
        Bb = B_pad // 2

    Tb = min(max(T, 1), 64) if time_block is None else max(1, min(int(time_block), max(T, 1)))

    mxu_dtype = jnp.bfloat16 if mxu_bf16 else f32
    w_itm = jnp.dtype(mxu_dtype).itemsize

    def vmem_need(tb, bb):
        n_wbuf = 1 if single_buffer_weights else 2
        bytes_w = (H_pad * H_pad + H_pad * O_pad) * w_itm * n_wbuf   # wrec.T + wo
        bytes_h0 = H_pad * 4 * n_wbuf
        bytes_in = 2 * tb * bb * H_pad * 4          # xproj stream (double-buffered)
        bytes_out = 2 * tb * bb * O_pad * 4         # fused-readout output stream
        bytes_scr = bb * H_pad * 4                  # hidden-state carry
        return bytes_w + bytes_h0 + bytes_in + bytes_out + bytes_scr

    # Auto-shrink Tb (then Bb) so weights + streams + scratch fit the generation budget.
    while vmem_need(Tb, Bb) > vmem_budget and (Tb > 1 or Bb > 8):
        if Tb > 1:
            Tb = max(1, Tb // 2)
        else:
            Bb = max(8, Bb // 2)
    T_pad = _round_up(max(T, 1), Tb)

    # Correct budget (no double-counted double-buffering, never clamped below need).
    vmem_limit = int(min(max(vmem_need(Tb, Bb) + (4 << 20), 32 << 20), vmem_cap))

    # Live-bytes-aware unroll of the serial inner loop.
    unroll = int(min(Tb, max(2, (256 << 10) // max(1, Bb * H_pad * 4))))
    unroll = max(1, min(unroll, Tb))

    # ---- Pad operands, go time-major ----
    xproj_tbh = jnp.transpose(xproj, (1, 0, 2))                                # (T, B, H)
    xproj_tbh = jnp.pad(xproj_tbh,
                        ((0, T_pad - T), (0, B_pad - B), (0, H_pad - H)))
    wrec_t = jnp.pad(wrec.T.astype(f32),
                     ((0, H_pad - H), (0, H_pad - H))).astype(mxu_dtype)       # (H_pad, H_pad)
    wo_p = jnp.pad(wo.astype(f32),
                   ((0, H_pad - H), (0, O_pad - O))).astype(mxu_dtype)         # (H_pad, O_pad)
    h0_2d = jnp.pad(h0.astype(f32).reshape(1, H), ((0, 0), (0, H_pad - H)))    # (1, H_pad)

    nb = B_pad // Bb
    nt = T_pad // Tb

    kernel = partial(_rnn_kernel, dt=float(dt), tb=Tb, unroll=unroll)

    def const_spec(shape, single_buffer):
        idx = (lambda b, t: (0, 0))
        if single_buffer:
            try:
                # Constant index map -> no prefetch needed; save the second buffer.
                return pl.BlockSpec(shape, idx, pipeline_mode=pl.Buffered(1))
            except Exception:
                pass
        return pl.BlockSpec(shape, idx)

    def build(single_buffer):
        return pl.pallas_call(
            kernel,
            out_shape=jax.ShapeDtypeStruct((T_pad, B_pad, O_pad), f32),
            grid_spec=pltpu.PrefetchScalarGridSpec(
                num_scalar_prefetch=0,
                grid=(nb, nt),                                     # batch outer, time innermost
                in_specs=[
                    pl.BlockSpec((Tb, Bb, H_pad), lambda b, t: (t, b, 0)),   # xproj stream
                    const_spec((H_pad, H_pad), single_buffer),               # wrec.T resident
                    const_spec((H_pad, O_pad), single_buffer),               # wo resident
                    const_spec((1, H_pad), single_buffer),                   # h0
                ],
                out_specs=pl.BlockSpec((Tb, Bb, O_pad), lambda b, t: (t, b, 0)),
                scratch_shapes=[pltpu.VMEM((Bb, H_pad), f32)],     # hidden-state carry
            ),
            compiler_params=pltpu.CompilerParams(
                dimension_semantics=("parallel", "arbitrary"),     # batch ||, time serial
                vmem_limit_bytes=vmem_limit,
            ),
        )

    if single_buffer_weights:
        try:
            out_pad = jax.block_until_ready(build(True)(xproj_tbh, wrec_t, wo_p, h0_2d))
        except Exception:
            # Fallback if this JAX/Mosaic build rejects single-buffered weight specs.
            out_pad = build(False)(xproj_tbh, wrec_t, wo_p, h0_2d)
    else:
        out_pad = build(False)(xproj_tbh, wrec_t, wo_p, h0_2d)

    out = out_pad[:T, :B, :O]                        # (T, B, O), un-pad
    return jnp.transpose(out, (1, 0, 2))             # (B, T, O)


def rnn_reference(x_bti, noise_bth, wi, wrec, wo, brec, h0, *, dt, noise_std):
    """Pure-JAX reference matching the PyTorch forward (non-ML_RNN, tanh, tanh readout)."""
    B = x_bti.shape[0]
    h = jnp.broadcast_to(h0[None, :], (B, h0.shape[0]))

    def step(h, inputs):
        x_t, n_t = inputs
        rec = jnp.tanh(h) @ wrec.T + x_t @ wi + brec
        h = (1.0 - dt) * h + dt * rec + math.sqrt(dt) * noise_std * n_t
        return h, jnp.tanh(h) @ wo

    _, out = lax.scan(step, h,
                      (jnp.transpose(x_bti, (1, 0, 2)),
                       jnp.transpose(noise_bth, (1, 0, 2))))
    return jnp.transpose(out, (1, 0, 2))


if __name__ == "__main__":
    # dims = [input_size, hidden_size, output_size]
    B, T = 2, 8
    I, H, O = 4, 32, 2
    dt, noise_std, g = 0.5, 0.1, 1.5

    key = jax.random.PRNGKey(0)
    k_x, k_n, k_wi, k_wrec, k_wo = jax.random.split(key, 5)

    # Deterministic parameter init matching the module's __init__:
    wi = jax.random.normal(k_wi, (I, H), jnp.float32)                           # N(0, 1)
    wrec = jax.random.normal(k_wrec, (H, H), jnp.float32) * (g / math.sqrt(H))  # N(0, g/sqrt(H))
    wo = jax.random.normal(k_wo, (H, O), jnp.float32) * (1.0 / H)               # N(0, 1/H)
    brec = jnp.zeros((H,), jnp.float32)
    h0 = jnp.zeros((H,), jnp.float32)

    # Inputs. The torch forward draws fresh noise internally; it is passed explicitly
    # here so the kernel is deterministic/reproducible.
    x = jax.random.normal(k_x, (B, T, I), jnp.float32)
    noise = jax.random.normal(k_n, (B, T, H), jnp.float32)

    ref = rnn_reference(x, noise, wi, wrec, wo, brec, h0, dt=dt, noise_std=noise_std)

    # f32-MXU path: tight structural check against the reference.
    out_f32 = rnn_forward(x, noise, wi, wrec, wo, brec, h0,
                          dt=dt, noise_std=noise_std, mxu_bf16=False)
    out_f32 = jax.block_until_ready(out_f32)
    assert out_f32.shape == (B, T, O)
    assert jnp.allclose(out_f32, ref, atol=1e-4, rtol=1e-4), "f32 Pallas RNN mismatch vs reference"

    # Default bf16-MXU path (f32 carry/accumulate): looser tolerance for bf16 rounding.
    # NOTE: bf16 rounding compounds over long T; keep mxu_bf16=False for strict use.
    out_bf16 = rnn_forward(x, noise, wi, wrec, wo, brec, h0,
                           dt=dt, noise_std=noise_std, mxu_bf16=True)
    out_bf16 = jax.block_until_ready(out_bf16)
    assert out_bf16.shape == (B, T, O)
    assert jnp.allclose(out_bf16, ref, atol=2e-2, rtol=2e-2), "bf16 Pallas RNN mismatch vs reference"

    # TODO(synk): return_dynamics=True (h_t trajectories output) and the numpy h_init
    # override path of forward() are not wired up; only the default output path is
    # implemented (add a second (Tb,Bb,H_pad) output when trajectories are needed).
    print("KERNEL_OK")
</pallas_src>

<mosaic_0001>
module attributes {stable_mosaic.version = 11 : i64} {
  func.func @_rnn_kernel(%arg0: i32, %arg1: i32, %arg2: memref<8x8x128xf32, #tpu.memory_space<vmem>>, %arg3: memref<128x128xf32, #tpu.memory_space<vmem>>, %arg4: memref<128x128xf32, #tpu.memory_space<vmem>>, %arg5: memref<1x128xf32, #tpu.memory_space<vmem>>, %arg6: memref<8x8x128xf32, #tpu.memory_space<vmem>>, %arg7: memref<8x128xf32, #tpu.memory_space<vmem>>) attributes {dimension_semantics = [#tpu.dimension_semantics<parallel>, #tpu.dimension_semantics<arbitrary>], iteration_bounds = array<i64: 1, 1>, scalar_prefetch = 0 : i64, scratch_operands = 1 : i64, tpu.core_type = #tpu.core_type<tc>, window_params = [{transform_indices = @transform_0, window_bounds = array<i64: 8, 8, 128>}, {pipeline_mode = #tpu.pipeline_mode<synchronous>, transform_indices = @transform_1, window_bounds = array<i64: 128, 128>}, {pipeline_mode = #tpu.pipeline_mode<synchronous>, transform_indices = @transform_2, window_bounds = array<i64: 128, 128>}, {pipeline_mode = #tpu.pipeline_mode<synchronous>, transform_indices = @transform_3, window_bounds = array<i64: 1, 128>}, {transform_indices = @transform_4, window_bounds = array<i64: 8, 8, 128>}]} {
    %c0_i32 = arith.constant 0 : i32
    %0 = arith.cmpi eq, %arg1, %c0_i32 : i32
    %1 = arith.extui %0 : i1 to i32
    %c0_i32_0 = arith.constant 0 : i32
    %2 = arith.cmpi ne, %1, %c0_i32_0 : i32
    scf.if %2 {
      %c0_58 = arith.constant 0 : index
      %c0_59 = arith.constant 0 : index
      %143 = vector.load %arg5[%c0_58, %c0_59] : memref<1x128xf32, #tpu.memory_space<vmem>>, vector<1x128xf32>
      %144 = vector.shape_cast %143 : vector<1x128xf32> to vector<1x128xf32>
      %145 = vector.broadcast %144 : vector<1x128xf32> to vector<8x128xf32>
      %c0_60 = arith.constant 0 : index
      %c0_61 = arith.constant 0 : index
      %146 = vector.load %arg7[%c0_60, %c0_61] : memref<8x128xf32, #tpu.memory_space<vmem>>, vector<8x128xf32>
      tpu.vector_store %arg7[%c0_60, %c0_61], %145 {strides = array<i32>} : memref<8x128xf32, #tpu.memory_space<vmem>>, vector<8x128xf32>,
    } else {
    }
    %c0 = arith.constant 0 : index
    %c0_1 = arith.constant 0 : index
    %3 = vector.load %arg3[%c0, %c0_1] : memref<128x128xf32, #tpu.memory_space<vmem>>, vector<128x128xf32>
    %c0_2 = arith.constant 0 : index
    %c0_3 = arith.constant 0 : index
    %4 = vector.load %arg4[%c0_2, %c0_3] : memref<128x128xf32, #tpu.memory_space<vmem>>, vector<128x128xf32>
    %c0_4 = arith.constant 0 : index
    %c0_5 = arith.constant 0 : index
    %5 = vector.load %arg7[%c0_4, %c0_5] : memref<8x128xf32, #tpu.memory_space<vmem>>, vector<8x128xf32>
    %cst = arith.constant 5.000000e-01 : f32
    %cst_6 = arith.constant 5.000000e-01 : f32
    %c0_i32_7 = arith.constant 0 : i32
    %6 = math.tanh %5 : vector<8x128xf32>
    %cst_8 = arith.constant dense<0.000000e+00> : vector<8x128xf32>
    %7 = tpu.matmul %6, %3, %cst_8 {dimension_numbers = #tpu.dot_dimension_numbers<[1], [0], [0], [1], [0, 0, 1, 1], [], []>} : vector<8x128xf32>, vector<128x128xf32>, vector<8x128xf32> -> vector<8x128xf32>
    %8 = vector.broadcast %cst : f32 to vector<8x128xf32>
    %9 = arith.mulf %8, %5 : vector<8x128xf32>
    %10 = vector.broadcast %cst_6 : f32 to vector<8x128xf32>
    %11 = arith.mulf %10, %7 : vector<8x128xf32>
    %12 = arith.addf %9, %11 : vector<8x128xf32>
    %13 = arith.index_cast %c0_i32_7 : i32 to index
    %c0_9 = arith.constant 0 : index
    %c0_10 = arith.constant 0 : index
    %14 = vector.load %arg2[%13, %c0_9, %c0_10] : memref<8x8x128xf32, #tpu.memory_space<vmem>>, vector<1x8x128xf32>
    %15 = vector.shape_cast %14 : vector<1x8x128xf32> to vector<8x128xf32>
    %16 = arith.addf %12, %15 : vector<8x128xf32>
    %17 = math.tanh %16 : vector<8x128xf32>
    %cst_11 = arith.constant dense<0.000000e+00> : vector<8x128xf32>
    %18 = tpu.matmul %17, %4, %cst_11 {dimension_numbers = #tpu.dot_dimension_numbers<[1], [0], [0], [1], [0, 0, 1, 1], [], []>} : vector<8x128xf32>, vector<128x128xf32>, vector<8x128xf32> -> vector<8x128xf32>
    %19 = arith.index_cast %c0_i32_7 : i32 to index
    %c0_12 = arith.constant 0 : index
    %c0_13 = arith.constant 0 : index
    %20 = vector.load %arg6[%19, %c0_12, %c0_13] : memref<8x8x128xf32, #tpu.memory_space<vmem>>, vector<1x8x128xf32>
    %21 = vector.shape_cast %20 : vector<1x8x128xf32> to vector<8x128xf32>
    %22 = vector.shape_cast %18 : vector<8x128xf32> to vector<1x8x128xf32>
    tpu.vector_store %arg6[%19, %c0_12, %c0_13], %22 {strides = array<i32>} : memref<8x8x128xf32, #tpu.memory_space<vmem>>, vector<1x8x128xf32>,
    %c1_i32 = arith.constant 1 : i32
    %23 = math.tanh %16 : vector<8x128xf32>
    %cst_14 = arith.constant dense<0.000000e+00> : vector<8x128xf32>
    %24 = tpu.matmul %23, %3, %cst_14 {dimension_numbers = #tpu.dot_dimension_numbers<[1], [0], [0], [1], [0, 0, 1, 1], [], []>} : vector<8x128xf32>, vector<128x128xf32>, vector<8x128xf32> -> vector<8x128xf32>
    %25 = vector.broadcast %cst : f32 to vector<8x128xf32>
    %26 = arith.mulf %25, %16 : vector<8x128xf32>
    %27 = vector.broadcast %cst_6 : f32 to vector<8x128xf32>
    %28 = arith.mulf %27, %24 : vector<8x128xf32>
    %29 = arith.addf %26, %28 : vector<8x128xf32>
    %30 = arith.index_cast %c1_i32 : i32 to index
    %c0_15 = arith.constant 0 : index
    %c0_16 = arith.constant 0 : index
    %31 = vector.load %arg2[%30, %c0_15, %c0_16] : memref<8x8x128xf32, #tpu.memory_space<vmem>>, vector<1x8x128xf32>
    %32 = vector.shape_cast %31 : vector<1x8x128xf32> to vector<8x128xf32>
    %33 = arith.addf %29, %32 : vector<8x128xf32>
    %34 = math.tanh %33 : vector<8x128xf32>
    %cst_17 = arith.constant dense<0.000000e+00> : vector<8x128xf32>
    %35 = tpu.matmul %34, %4, %cst_17 {dimension_numbers = #tpu.dot_dimension_numbers<[1], [0], [0], [1], [0, 0, 1, 1], [], []>} : vector<8x128xf32>, vector<128x128xf32>, vector<8x128xf32> -> vector<8x128xf32>
    %36 = arith.index_cast %c1_i32 : i32 to index
    %c0_18 = arith.constant 0 : index
    %c0_19 = arith.constant 0 : index
    %37 = vector.load %arg6[%36, %c0_18, %c0_19] : memref<8x8x128xf32, #tpu.memory_space<vmem>>, vector<1x8x128xf32>
    %38 = vector.shape_cast %37 : vector<1x8x128xf32> to vector<8x128xf32>
    %39 = vector.shape_cast %35 : vector<8x128xf32> to vector<1x8x128xf32>
    tpu.vector_store %arg6[%36, %c0_18, %c0_19], %39 {strides = array<i32>} : memref<8x8x128xf32, #tpu.memory_space<vmem>>, vector<1x8x128xf32>,
    %c2_i32 = arith.constant 2 : i32
    %40 = math.tanh %33 : vector<8x128xf32>
    %cst_20 = arith.constant dense<0.000000e+00> : vector<8x128xf32>
    %41 = tpu.matmul %40, %3, %cst_20 {dimension_numbers = #tpu.dot_dimension_numbers<[1], [0], [0], [1], [0, 0, 1, 1], [], []>} : vector<8x128xf32>, vector<128x128xf32>, vector<8x128xf32> -> vector<8x128xf32>
    %42 = vector.broadcast %cst : f32 to vector<8x128xf32>
    %43 = arith.mulf %42, %33 : vector<8x128xf32>
    %44 = vector.broadcast %cst_6 : f32 to vector<8x128xf32>
    %45 = arith.mulf %44, %41 : vector<8x128xf32>
    %46 = arith.addf %43, %45 : vector<8x128xf32>
    %47 = arith.index_cast %c2_i32 : i32 to index
    %c0_21 = arith.constant 0 : index
    %c0_22 = arith.constant 0 : index
    %48 = vector.load %arg2[%47, %c0_21, %c0_22] : memref<8x8x128xf32, #tpu.memory_space<vmem>>, vector<1x8x128xf32>
    %49 = vector.shape_cast %48 : vector<1x8x128xf32> to vector<8x128xf32>
    %50 = arith.addf %46, %49 : vector<8x128xf32>
    %51 = math.tanh %50 : vector<8x128xf32>
    %cst_23 = arith.constant dense<0.000000e+00> : vector<8x128xf32>
    %52 = tpu.matmul %51, %4, %cst_23 {dimension_numbers = #tpu.dot_dimension_numbers<[1], [0], [0], [1], [0, 0, 1, 1], [], []>} : vector<8x128xf32>, vector<128x128xf32>, vector<8x128xf32> -> vector<8x128xf32>
    %53 = arith.index_cast %c2_i32 : i32 to index
    %c0_24 = arith.constant 0 : index
    %c0_25 = arith.constant 0 : index
    %54 = vector.load %arg6[%53, %c0_24, %c0_25] : memref<8x8x128xf32, #tpu.memory_space<vmem>>, vector<1x8x128xf32>
    %55 = vector.shape_cast %54 : vector<1x8x128xf32> to vector<8x128xf32>
    %56 = vector.shape_cast %52 : vector<8x128xf32> to vector<1x8x128xf32>
    tpu.vector_store %arg6[%53, %c0_24, %c0_25], %56 {strides = array<i32>} : memref<8x8x128xf32, #tpu.memory_space<vmem>>, vector<1x8x128xf32>,
    %c3_i32 = arith.constant 3 : i32
    %57 = math.tanh %50 : vector<8x128xf32>
    %cst_26 = arith.constant dense<0.000000e+00> : vector<8x128xf32>
    %58 = tpu.matmul %57, %3, %cst_26 {dimension_numbers = #tpu.dot_dimension_numbers<[1], [0], [0], [1], [0, 0, 1, 1], [], []>} : vector<8x128xf32>, vector<128x128xf32>, vector<8x128xf32> -> vector<8x128xf32>
    %59 = vector.broadcast %cst : f32 to vector<8x128xf32>
    %60 = arith.mulf %59, %50 : vector<8x128xf32>
    %61 = vector.broadcast %cst_6 : f32 to vector<8x128xf32>
    %62 = arith.mulf %61, %58 : vector<8x128xf32>
    %63 = arith.addf %60, %62 : vector<8x128xf32>
    %64 = arith.index_cast %c3_i32 : i32 to index
    %c0_27 = arith.constant 0 : index
    %c0_28 = arith.constant 0 : index
    %65 = vector.load %arg2[%64, %c0_27, %c0_28] : memref<8x8x128xf32, #tpu.memory_space<vmem>>, vector<1x8x128xf32>
    %66 = vector.shape_cast %65 : vector<1x8x128xf32> to vector<8x128xf32>
    %67 = arith.addf %63, %66 : vector<8x128xf32>
    %68 = math.tanh %67 : vector<8x128xf32>
    %cst_29 = arith.constant dense<0.000000e+00> : vector<8x128xf32>
    %69 = tpu.matmul %68, %4, %cst_29 {dimension_numbers = #tpu.dot_dimension_numbers<[1], [0], [0], [1], [0, 0, 1, 1], [], []>} : vector<8x128xf32>, vector<128x128xf32>, vector<8x128xf32> -> vector<8x128xf32>
    %70 = arith.index_cast %c3_i32 : i32 to index
    %c0_30 = arith.constant 0 : index
    %c0_31 = arith.constant 0 : index
    %71 = vector.load %arg6[%70, %c0_30, %c0_31] : memref<8x8x128xf32, #tpu.memory_space<vmem>>, vector<1x8x128xf32>
    %72 = vector.shape_cast %71 : vector<1x8x128xf32> to vector<8x128xf32>
    %73 = vector.shape_cast %69 : vector<8x128xf32> to vector<1x8x128xf32>
    tpu.vector_store %arg6[%70, %c0_30, %c0_31], %73 {strides = array<i32>} : memref<8x8x128xf32, #tpu.memory_space<vmem>>, vector<1x8x128xf32>,
    %c4_i32 = arith.constant 4 : i32
    %74 = math.tanh %67 : vector<8x128xf32>
    %cst_32 = arith.constant dense<0.000000e+00> : vector<8x128xf32>
    %75 = tpu.matmul %74, %3, %cst_32 {dimension_numbers = #tpu.dot_dimension_numbers<[1], [0], [0], [1], [0, 0, 1, 1], [], []>} : vector<8x128xf32>, vector<128x128xf32>, vector<8x128xf32> -> vector<8x128xf32>
    %76 = vector.broadcast %cst : f32 to vector<8x128xf32>
    %77 = arith.mulf %76, %67 : vector<8x128xf32>
    %78 = vector.broadcast %cst_6 : f32 to vector<8x128xf32>
    %79 = arith.mulf %78, %75 : vector<8x128xf32>
    %80 = arith.addf %77, %79 : vector<8x128xf32>
    %81 = arith.index_cast %c4_i32 : i32 to index
    %c0_33 = arith.constant 0 : index
    %c0_34 = arith.constant 0 : index
    %82 = vector.load %arg2[%81, %c0_33, %c0_34] : memref<8x8x128xf32, #tpu.memory_space<vmem>>, vector<1x8x128xf32>
    %83 = vector.shape_cast %82 : vector<1x8x128xf32> to vector<8x128xf32>
    %84 = arith.addf %80, %83 : vector<8x128xf32>
    %85 = math.tanh %84 : vector<8x128xf32>
    %cst_35 = arith.constant dense<0.000000e+00> : vector<8x128xf32>
    %86 = tpu.matmul %85, %4, %cst_35 {dimension_numbers = #tpu.dot_dimension_numbers<[1], [0], [0], [1], [0, 0, 1, 1], [], []>} : vector<8x128xf32>, vector<128x128xf32>, vector<8x128xf32> -> vector<8x128xf32>
    %87 = arith.index_cast %c4_i32 : i32 to index
    %c0_36 = arith.constant 0 : index
    %c0_37 = arith.constant 0 : index
    %88 = vector.load %arg6[%87, %c0_36, %c0_37] : memref<8x8x128xf32, #tpu.memory_space<vmem>>, vector<1x8x128xf32>
    %89 = vector.shape_cast %88 : vector<1x8x128xf32> to vector<8x128xf32>
    %90 = vector.shape_cast %86 : vector<8x128xf32> to vector<1x8x128xf32>
    tpu.vector_store %arg6[%87, %c0_36, %c0_37], %90 {strides = array<i32>} : memref<8x8x128xf32, #tpu.memory_space<vmem>>, vector<1x8x128xf32>,
    %c5_i32 = arith.constant 5 : i32
    %91 = math.tanh %84 : vector<8x128xf32>
    %cst_38 = arith.constant dense<0.000000e+00> : vector<8x128xf32>
    %92 = tpu.matmul %91, %3, %cst_38 {dimension_numbers = #tpu.dot_dimension_numbers<[1], [0], [0], [1], [0, 0, 1, 1], [], []>} : vector<8x128xf32>, vector<128x128xf32>, vector<8x128xf32> -> vector<8x128xf32>
    %93 = vector.broadcast %cst : f32 to vector<8x128xf32>
    %94 = arith.mulf %93, %84 : vector<8x128xf32>
    %95 = vector.broadcast %cst_6 : f32 to vector<8x128xf32>
    %96 = arith.mulf %95, %92 : vector<8x128xf32>
    %97 = arith.addf %94, %96 : vector<8x128xf32>
    %98 = arith.index_cast %c5_i32 : i32 to index
    %c0_39 = arith.constant 0 : index
    %c0_40 = arith.constant 0 : index
    %99 = vector.load %arg2[%98, %c0_39, %c0_40] : memref<8x8x128xf32, #tpu.memory_space<vmem>>, vector<1x8x128xf32>
    %100 = vector.shape_cast %99 : vector<1x8x128xf32> to vector<8x128xf32>
    %101 = arith.addf %97, %100 : vector<8x128xf32>
    %102 = math.tanh %101 : vector<8x128xf32>
    %cst_41 = arith.constant dense<0.000000e+00> : vector<8x128xf32>
    %103 = tpu.matmul %102, %4, %cst_41 {dimension_numbers = #tpu.dot_dimension_numbers<[1], [0], [0], [1], [0, 0, 1, 1], [], []>} : vector<8x128xf32>, vector<128x128xf32>, vector<8x128xf32> -> vector<8x128xf32>
    %104 = arith.index_cast %c5_i32 : i32 to index
    %c0_42 = arith.constant 0 : index
    %c0_43 = arith.constant 0 : index
    %105 = vector.load %arg6[%104, %c0_42, %c0_43] : memref<8x8x128xf32, #tpu.memory_space<vmem>>, vector<1x8x128xf32>
    %106 = vector.shape_cast %105 : vector<1x8x128xf32> to vector<8x128xf32>
    %107 = vector.shape_cast %103 : vector<8x128xf32> to vector<1x8x128xf32>
    tpu.vector_store %arg6[%104, %c0_42, %c0_43], %107 {strides = array<i32>} : memref<8x8x128xf32, #tpu.memory_space<vmem>>, vector<1x8x128xf32>,
    %c6_i32 = arith.constant 6 : i32
    %108 = math.tanh %101 : vector<8x128xf32>
    %cst_44 = arith.constant dense<0.000000e+00> : vector<8x128xf32>
    %109 = tpu.matmul %108, %3, %cst_44 {dimension_numbers = #tpu.dot_dimension_numbers<[1], [0], [0], [1], [0, 0, 1, 1], [], []>} : vector<8x128xf32>, vector<128x128xf32>, vector<8x128xf32> -> vector<8x128xf32>
    %110 = vector.broadcast %cst : f32 to vector<8x128xf32>
    %111 = arith.mulf %110, %101 : vector<8x128xf32>
    %112 = vector.broadcast %cst_6 : f32 to vector<8x128xf32>
    %113 = arith.mulf %112, %109 : vector<8x128xf32>
    %114 = arith.addf %111, %113 : vector<8x128xf32>
    %115 = arith.index_cast %c6_i32 : i32 to index
    %c0_45 = arith.constant 0 : index
    %c0_46 = arith.constant 0 : index
    %116 = vector.load %arg2[%115, %c0_45, %c0_46] : memref<8x8x128xf32, #tpu.memory_space<vmem>>, vector<1x8x128xf32>
    %117 = vector.shape_cast %116 : vector<1x8x128xf32> to vector<8x128xf32>
    %118 = arith.addf %114, %117 : vector<8x128xf32>
    %119 = math.tanh %118 : vector<8x128xf32>
    %cst_47 = arith.constant dense<0.000000e+00> : vector<8x128xf32>
    %120 = tpu.matmul %119, %4, %cst_47 {dimension_numbers = #tpu.dot_dimension_numbers<[1], [0], [0], [1], [0, 0, 1, 1], [], []>} : vector<8x128xf32>, vector<128x128xf32>, vector<8x128xf32> -> vector<8x128xf32>
    %121 = arith.index_cast %c6_i32 : i32 to index
    %c0_48 = arith.constant 0 : index
    %c0_49 = arith.constant 0 : index
    %122 = vector.load %arg6[%121, %c0_48, %c0_49] : memref<8x8x128xf32, #tpu.memory_space<vmem>>, vector<1x8x128xf32>
    %123 = vector.shape_cast %122 : vector<1x8x128xf32> to vector<8x128xf32>
    %124 = vector.shape_cast %120 : vector<8x128xf32> to vector<1x8x128xf32>
    tpu.vector_store %arg6[%121, %c0_48, %c0_49], %124 {strides = array<i32>} : memref<8x8x128xf32, #tpu.memory_space<vmem>>, vector<1x8x128xf32>,
    %c7_i32 = arith.constant 7 : i32
    %125 = math.tanh %118 : vector<8x128xf32>
    %cst_50 = arith.constant dense<0.000000e+00> : vector<8x128xf32>
    %126 = tpu.matmul %125, %3, %cst_50 {dimension_numbers = #tpu.dot_dimension_numbers<[1], [0], [0], [1], [0, 0, 1, 1], [], []>} : vector<8x128xf32>, vector<128x128xf32>, vector<8x128xf32> -> vector<8x128xf32>
    %127 = vector.broadcast %cst : f32 to vector<8x128xf32>
    %128 = arith.mulf %127, %118 : vector<8x128xf32>
    %129 = vector.broadcast %cst_6 : f32 to vector<8x128xf32>
    %130 = arith.mulf %129, %126 : vector<8x128xf32>
    %131 = arith.addf %128, %130 : vector<8x128xf32>
    %132 = arith.index_cast %c7_i32 : i32 to index
    %c0_51 = arith.constant 0 : index
    %c0_52 = arith.constant 0 : index
    %133 = vector.load %arg2[%132, %c0_51, %c0_52] : memref<8x8x128xf32, #tpu.memory_space<vmem>>, vector<1x8x128xf32>
    %134 = vector.shape_cast %133 : vector<1x8x128xf32> to vector<8x128xf32>
    %135 = arith.addf %131, %134 : vector<8x128xf32>
    %136 = math.tanh %135 : vector<8x128xf32>
    %cst_53 = arith.constant dense<0.000000e+00> : vector<8x128xf32>
    %137 = tpu.matmul %136, %4, %cst_53 {dimension_numbers = #tpu.dot_dimension_numbers<[1], [0], [0], [1], [0, 0, 1, 1], [], []>} : vector<8x128xf32>, vector<128x128xf32>, vector<8x128xf32> -> vector<8x128xf32>
    %138 = arith.index_cast %c7_i32 : i32 to index
    %c0_54 = arith.constant 0 : index
    %c0_55 = arith.constant 0 : index
    %139 = vector.load %arg6[%138, %c0_54, %c0_55] : memref<8x8x128xf32, #tpu.memory_space<vmem>>, vector<1x8x128xf32>
    %140 = vector.shape_cast %139 : vector<1x8x128xf32> to vector<8x128xf32>
    %141 = vector.shape_cast %137 : vector<8x128xf32> to vector<1x8x128xf32>
    tpu.vector_store %arg6[%138, %c0_54, %c0_55], %141 {strides = array<i32>} : memref<8x8x128xf32, #tpu.memory_space<vmem>>, vector<1x8x128xf32>,
    %c8_i32 = arith.constant 8 : i32
    %c0_56 = arith.constant 0 : index
    %c0_57 = arith.constant 0 : index
    %142 = vector.load %arg7[%c0_56, %c0_57] : memref<8x128xf32, #tpu.memory_space<vmem>>, vector<8x128xf32>
    tpu.vector_store %arg7[%c0_56, %c0_57], %135 {strides = array<i32>} : memref<8x128xf32, #tpu.memory_space<vmem>>, vector<8x128xf32>,
    return
  }
  func.func @transform_0(%arg0: i32, %arg1: i32) -> (i32, i32, i32) {
    %c0_i32 = arith.constant 0 : i32
    %c0_i32_0 = arith.constant 0 : i32
    return %arg1, %arg0, %c0_i32 : i32, i32, i32
  }
  func.func @transform_1(%arg0: i32, %arg1: i32) -> (i32, i32) {
    %c0_i32 = arith.constant 0 : i32
    %c0_i32_0 = arith.constant 0 : i32
    %c0_i32_1 = arith.constant 0 : i32
    return %c0_i32, %c0_i32_0 : i32, i32
  }
  func.func @transform_2(%arg0: i32, %arg1: i32) -> (i32, i32) {
    %c0_i32 = arith.constant 0 : i32
    %c0_i32_0 = arith.constant 0 : i32
    %c0_i32_1 = arith.constant 0 : i32
    return %c0_i32, %c0_i32_0 : i32, i32
  }
  func.func @transform_3(%arg0: i32, %arg1: i32) -> (i32, i32) {
    %c0_i32 = arith.constant 0 : i32
    %c0_i32_0 = arith.constant 0 : i32
    %c0_i32_1 = arith.constant 0 : i32
    return %c0_i32, %c0_i32_0 : i32, i32
  }
  func.func @transform_4(%arg0: i32, %arg1: i32) -> (i32, i32, i32) {
    %c0_i32 = arith.constant 0 : i32
    %c0_i32_0 = arith.constant 0 : i32
    return %arg1, %arg0, %c0_i32 : i32, i32, i32
  }
}

module attributes {stable_mosaic.version = 11 : i64} {
  func.func @_rnn_kernel(%arg0: i32, %arg1: i32, %arg2: memref<8x8x128xf32, #tpu.memory_space<vmem>>, %arg3: memref<128x128xf32, #tpu.memory_space<vmem>>, %arg4: memref<128x128xf32, #tpu.memory_space<vmem>>, %arg5: memref<1x128xf32, #tpu.memory_space<vmem>>, %arg6: memref<8x8x128xf32, #tpu.memory_space<vmem>>, %arg7: memref<8x128xf32, #tpu.memory_space<vmem>>) attributes {dimension_semantics = [#tpu.dimension_semantics<parallel>, #tpu.dimension_semantics<arbitrary>], iteration_bounds = array<i64: 1, 1>, scalar_prefetch = 0 : i64, scratch_operands = 1 : i64, tpu.core_type = #tpu.core_type<tc>, window_params = [{transform_indices = @transform_0, window_bounds = array<i64: 8, 8, 128>}, {pipeline_mode = #tpu.pipeline_mode<synchronous>, transform_indices = @transform_1, window_bounds = array<i64: 128, 128>}, {pipeline_mode = #tpu.pipeline_mode<synchronous>, transform_indices = @transform_2, window_bounds = array<i64: 128, 128>}, {pipeline_mode = #tpu.pipeline_mode<synchronous>, transform_indices = @transform_3, window_bounds = array<i64: 1, 128>}, {transform_indices = @transform_4, window_bounds = array<i64: 8, 8, 128>}]} {
    %c0_i32 = arith.constant 0 : i32
    %0 = arith.cmpi eq, %arg1, %c0_i32 : i32
    %1 = arith.extui %0 : i1 to i32
    %c0_i32_0 = arith.constant 0 : i32
    %2 = arith.cmpi ne, %1, %c0_i32_0 : i32
    scf.if %2 {
      %c0_58 = arith.constant 0 : index
      %c0_59 = arith.constant 0 : index
      %143 = vector.load %arg5[%c0_58, %c0_59] : memref<1x128xf32, #tpu.memory_space<vmem>>, vector<1x128xf32>
      %144 = vector.shape_cast %143 : vector<1x128xf32> to vector<1x128xf32>
      %145 = vector.broadcast %144 : vector<1x128xf32> to vector<8x128xf32>
      %c0_60 = arith.constant 0 : index
      %c0_61 = arith.constant 0 : index
      %146 = vector.load %arg7[%c0_60, %c0_61] : memref<8x128xf32, #tpu.memory_space<vmem>>, vector<8x128xf32>
      tpu.vector_store %arg7[%c0_60, %c0_61], %145 {strides = array<i32>} : memref<8x128xf32, #tpu.memory_space<vmem>>, vector<8x128xf32>,
    } else {
    }
    %c0 = arith.constant 0 : index
    %c0_1 = arith.constant 0 : index
    %3 = vector.load %arg3[%c0, %c0_1] : memref<128x128xf32, #tpu.memory_space<vmem>>, vector<128x128xf32>
    %c0_2 = arith.constant 0 : index
    %c0_3 = arith.constant 0 : index
    %4 = vector.load %arg4[%c0_2, %c0_3] : memref<128x128xf32, #tpu.memory_space<vmem>>, vector<128x128xf32>
    %c0_4 = arith.constant 0 : index
    %c0_5 = arith.constant 0 : index
    %5 = vector.load %arg7[%c0_4, %c0_5] : memref<8x128xf32, #tpu.memory_space<vmem>>, vector<8x128xf32>
    %cst = arith.constant 5.000000e-01 : f32
    %cst_6 = arith.constant 5.000000e-01 : f32
    %c0_i32_7 = arith.constant 0 : i32
    %6 = math.tanh %5 : vector<8x128xf32>
    %cst_8 = arith.constant dense<0.000000e+00> : vector<8x128xf32>
    %7 = tpu.matmul %6, %3, %cst_8 {dimension_numbers = #tpu.dot_dimension_numbers<[1], [0], [0], [1], [0, 0, 1, 1], [], []>} : vector<8x128xf32>, vector<128x128xf32>, vector<8x128xf32> -> vector<8x128xf32>
    %8 = vector.broadcast %cst : f32 to vector<8x128xf32>
    %9 = arith.mulf %8, %5 : vector<8x128xf32>
    %10 = vector.broadcast %cst_6 : f32 to vector<8x128xf32>
    %11 = arith.mulf %10, %7 : vector<8x128xf32>
    %12 = arith.addf %9, %11 : vector<8x128xf32>
    %13 = arith.index_cast %c0_i32_7 : i32 to index
    %c0_9 = arith.constant 0 : index
    %c0_10 = arith.constant 0 : index
    %14 = vector.load %arg2[%13, %c0_9, %c0_10] : memref<8x8x128xf32, #tpu.memory_space<vmem>>, vector<1x8x128xf32>
    %15 = vector.shape_cast %14 : vector<1x8x128xf32> to vector<8x128xf32>
    %16 = arith.addf %12, %15 : vector<8x128xf32>
    %17 = math.tanh %16 : vector<8x128xf32>
    %cst_11 = arith.constant dense<0.000000e+00> : vector<8x128xf32>
    %18 = tpu.matmul %17, %4, %cst_11 {dimension_numbers = #tpu.dot_dimension_numbers<[1], [0], [0], [1], [0, 0, 1, 1], [], []>} : vector<8x128xf32>, vector<128x128xf32>, vector<8x128xf32> -> vector<8x128xf32>
    %19 = arith.index_cast %c0_i32_7 : i32 to index
    %c0_12 = arith.constant 0 : index
    %c0_13 = arith.constant 0 : index
    %20 = vector.load %arg6[%19, %c0_12, %c0_13] : memref<8x8x128xf32, #tpu.memory_space<vmem>>, vector<1x8x128xf32>
    %21 = vector.shape_cast %20 : vector<1x8x128xf32> to vector<8x128xf32>
    %22 = vector.shape_cast %18 : vector<8x128xf32> to vector<1x8x128xf32>
    tpu.vector_store %arg6[%19, %c0_12, %c0_13], %22 {strides = array<i32>} : memref<8x8x128xf32, #tpu.memory_space<vmem>>, vector<1x8x128xf32>,
    %c1_i32 = arith.constant 1 : i32
    %23 = math.tanh %16 : vector<8x128xf32>
    %cst_14 = arith.constant dense<0.000000e+00> : vector<8x128xf32>
    %24 = tpu.matmul %23, %3, %cst_14 {dimension_numbers = #tpu.dot_dimension_numbers<[1], [0], [0], [1], [0, 0, 1, 1], [], []>} : vector<8x128xf32>, vector<128x128xf32>, vector<8x128xf32> -> vector<8x128xf32>
    %25 = vector.broadcast %cst : f32 to vector<8x128xf32>
    %26 = arith.mulf %25, %16 : vector<8x128xf32>
    %27 = vector.broadcast %cst_6 : f32 to vector<8x128xf32>
    %28 = arith.mulf %27, %24 : vector<8x128xf32>
    %29 = arith.addf %26, %28 : vector<8x128xf32>
    %30 = arith.index_cast %c1_i32 : i32 to index
    %c0_15 = arith.constant 0 : index
    %c0_16 = arith.constant 0 : index
    %31 = vector.load %arg2[%30, %c0_15, %c0_16] : memref<8x8x128xf32, #tpu.memory_space<vmem>>, vector<1x8x128xf32>
    %32 = vector.shape_cast %31 : vector<1x8x128xf32> to vector<8x128xf32>
    %33 = arith.addf %29, %32 : vector<8x128xf32>
    %34 = math.tanh %33 : vector<8x128xf32>
    %cst_17 = arith.constant dense<0.000000e+00> : vector<8x128xf32>
    %35 = tpu.matmul %34, %4, %cst_17 {dimension_numbers = #tpu.dot_dimension_numbers<[1], [0], [0], [1], [0, 0, 1, 1], [], []>} : vector<8x128xf32>, vector<128x128xf32>, vector<8x128xf32> -> vector<8x128xf32>
    %36 = arith.index_cast %c1_i32 : i32 to index
    %c0_18 = arith.constant 0 : index
    %c0_19 = arith.constant 0 : index
    %37 = vector.load %arg6[%36, %c0_18, %c0_19] : memref<8x8x128xf32, #tpu.memory_space<vmem>>, vector<1x8x128xf32>
    %38 = vector.shape_cast %37 : vector<1x8x128xf32> to vector<8x128xf32>
    %39 = vector.shape_cast %35 : vector<8x128xf32> to vector<1x8x128xf32>
    tpu.vector_store %arg6[%36, %c0_18, %c0_19], %39 {strides = array<i32>} : memref<8x8x128xf32, #tpu.memory_space<vmem>>, vector<1x8x128xf32>,
    %c2_i32 = arith.constant 2 : i32
    %40 = math.tanh %33 : vector<8x128xf32>
    %cst_20 = arith.constant dense<0.000000e+00> : vector<8x128xf32>
    %41 = tpu.matmul %40, %3, %cst_20 {dimension_numbers = #tpu.dot_dimension_numbers<[1], [0], [0], [1], [0, 0, 1, 1], [], []>} : vector<8x128xf32>, vector<128x128xf32>, vector<8x128xf32> -> vector<8x128xf32>
    %42 = vector.broadcast %cst : f32 to vector<8x128xf32>
    %43 = arith.mulf %42, %33 : vector<8x128xf32>
    %44 = vector.broadcast %cst_6 : f32 to vector<8x128xf32>
    %45 = arith.mulf %44, %41 : vector<8x128xf32>
    %46 = arith.addf %43, %45 : vector<8x128xf32>
    %47 = arith.index_cast %c2_i32 : i32 to index
    %c0_21 = arith.constant 0 : index
    %c0_22 = arith.constant 0 : index
    %48 = vector.load %arg2[%47, %c0_21, %c0_22] : memref<8x8x128xf32, #tpu.memory_space<vmem>>, vector<1x8x128xf32>
    %49 = vector.shape_cast %48 : vector<1x8x128xf32> to vector<8x128xf32>
    %50 = arith.addf %46, %49 : vector<8x128xf32>
    %51 = math.tanh %50 : vector<8x128xf32>
    %cst_23 = arith.constant dense<0.000000e+00> : vector<8x128xf32>
    %52 = tpu.matmul %51, %4, %cst_23 {dimension_numbers = #tpu.dot_dimension_numbers<[1], [0], [0], [1], [0, 0, 1, 1], [], []>} : vector<8x128xf32>, vector<128x128xf32>, vector<8x128xf32> -> vector<8x128xf32>
    %53 = arith.index_cast %c2_i32 : i32 to index
    %c0_24 = arith.constant 0 : index
    %c0_25 = arith.constant 0 : index
    %54 = vector.load %arg6[%53, %c0_24, %c0_25] : memref<8x8x128xf32, #tpu.memory_space<vmem>>, vector<1x8x128xf32>
    %55 = vector.shape_cast %54 : vector<1x8x128xf32> to vector<8x128xf32>
    %56 = vector.shape_cast %52 : vector<8x128xf32> to vector<1x8x128xf32>
    tpu.vector_store %arg6[%53, %c0_24, %c0_25], %56 {strides = array<i32>} : memref<8x8x128xf32, #tpu.memory_space<vmem>>, vector<1x8x128xf32>,
    %c3_i32 = arith.constant 3 : i32
    %57 = math.tanh %50 : vector<8x128xf32>
    %cst_26 = arith.constant dense<0.000000e+00> : vector<8x128xf32>
    %58 = tpu.matmul %57, %3, %cst_26 {dimension_numbers = #tpu.dot_dimension_numbers<[1], [0], [0], [1], [0, 0, 1, 1], [], []>} : vector<8x128xf32>, vector<128x128xf32>, vector<8x128xf32> -> vector<8x128xf32>
    %59 = vector.broadcast %cst : f32 to vector<8x128xf32>
    %60 = arith.mulf %59, %50 : vector<8x128xf32>
    %61 = vector.broadcast %cst_6 : f32 to vector<8x128xf32>
    %62 = arith.mulf %61, %58 : vector<8x128xf32>
    %63 = arith.addf %60, %62 : vector<8x128xf32>
    %64 = arith.index_cast %c3_i32 : i32 to index
    %c0_27 = arith.constant 0 : index
    %c0_28 = arith.constant 0 : index
    %65 = vector.load %arg2[%64, %c0_27, %c0_28] : memref<8x8x128xf32, #tpu.memory_space<vmem>>, vector<1x8x128xf32>
    %66 = vector.shape_cast %65 : vector<1x8x128xf32> to vector<8x128xf32>
    %67 = arith.addf %63, %66 : vector<8x128xf32>
    %68 = math.tanh %67 : vector<8x128xf32>
    %cst_29 = arith.constant dense<0.000000e+00> : vector<8x128xf32>
    %69 = tpu.matmul %68, %4, %cst_29 {dimension_numbers = #tpu.dot_dimension_numbers<[1], [0], [0], [1], [0, 0, 1, 1], [], []>} : vector<8x128xf32>, vector<128x128xf32>, vector<8x128xf32> -> vector<8x128xf32>
    %70 = arith.index_cast %c3_i32 : i32 to index
    %c0_30 = arith.constant 0 : index
    %c0_31 = arith.constant 0 : index
    %71 = vector.load %arg6[%70, %c0_30, %c0_31] : memref<8x8x128xf32, #tpu.memory_space<vmem>>, vector<1x8x128xf32>
    %72 = vector.shape_cast %71 : vector<1x8x128xf32> to vector<8x128xf32>
    %73 = vector.shape_cast %69 : vector<8x128xf32> to vector<1x8x128xf32>
    tpu.vector_store %arg6[%70, %c0_30, %c0_31], %73 {strides = array<i32>} : memref<8x8x128xf32, #tpu.memory_space<vmem>>, vector<1x8x128xf32>,
    %c4_i32 = arith.constant 4 : i32
    %74 = math.tanh %67 : vector<8x128xf32>
    %cst_32 = arith.constant dense<0.000000e+00> : vector<8x128xf32>
    %75 = tpu.matmul %74, %3, %cst_32 {dimension_numbers = #tpu.dot_dimension_numbers<[1], [0], [0], [1], [0, 0, 1, 1], [], []>} : vector<8x128xf32>, vector<128x128xf32>, vector<8x128xf32> -> vector<8x128xf32>
    %76 = vector.broadcast %cst : f32 to vector<8x128xf32>
    %77 = arith.mulf %76, %67 : vector<8x128xf32>
    %78 = vector.broadcast %cst_6 : f32 to vector<8x128xf32>
    %79 = arith.mulf %78, %75 : vector<8x128xf32>
    %80 = arith.addf %77, %79 : vector<8x128xf32>
    %81 = arith.index_cast %c4_i32 : i32 to index
    %c0_33 = arith.constant 0 : index
    %c0_34 = arith.constant 0 : index
    %82 = vector.load %arg2[%81, %c0_33, %c0_34] : memref<8x8x128xf32, #tpu.memory_space<vmem>>, vector<1x8x128xf32>
    %83 = vector.shape_cast %82 : vector<1x8x128xf32> to vector<8x128xf32>
    %84 = arith.addf %80, %83 : vector<8x128xf32>
    %85 = math.tanh %84 : vector<8x128xf32>
    %cst_35 = arith.constant dense<0.000000e+00> : vector<8x128xf32>
    %86 = tpu.matmul %85, %4, %cst_35 {dimension_numbers = #tpu.dot_dimension_numbers<[1], [0], [0], [1], [0, 0, 1, 1], [], []>} : vector<8x128xf32>, vector<128x128xf32>, vector<8x128xf32> -> vector<8x128xf32>
    %87 = arith.index_cast %c4_i32 : i32 to index
    %c0_36 = arith.constant 0 : index
    %c0_37 = arith.constant 0 : index
    %88 = vector.load %arg6[%87, %c0_36, %c0_37] : memref<8x8x128xf32, #tpu.memory_space<vmem>>, vector<1x8x128xf32>
    %89 = vector.shape_cast %88 : vector<1x8x128xf32> to vector<8x128xf32>
    %90 = vector.shape_cast %86 : vector<8x128xf32> to vector<1x8x128xf32>
    tpu.vector_store %arg6[%87, %c0_36, %c0_37], %90 {strides = array<i32>} : memref<8x8x128xf32, #tpu.memory_space<vmem>>, vector<1x8x128xf32>,
    %c5_i32 = arith.constant 5 : i32
    %91 = math.tanh %84 : vector<8x128xf32>
    %cst_38 = arith.constant dense<0.000000e+00> : vector<8x128xf32>
    %92 = tpu.matmul %91, %3, %cst_38 {dimension_numbers = #tpu.dot_dimension_numbers<[1], [0], [0], [1], [0, 0, 1, 1], [], []>} : vector<8x128xf32>, vector<128x128xf32>, vector<8x128xf32> -> vector<8x128xf32>
    %93 = vector.broadcast %cst : f32 to vector<8x128xf32>
    %94 = arith.mulf %93, %84 : vector<8x128xf32>
    %95 = vector.broadcast %cst_6 : f32 to vector<8x128xf32>
    %96 = arith.mulf %95, %92 : vector<8x128xf32>
    %97 = arith.addf %94, %96 : vector<8x128xf32>
    %98 = arith.index_cast %c5_i32 : i32 to index
    %c0_39 = arith.constant 0 : index
    %c0_40 = arith.constant 0 : index
    %99 = vector.load %arg2[%98, %c0_39, %c0_40] : memref<8x8x128xf32, #tpu.memory_space<vmem>>, vector<1x8x128xf32>
    %100 = vector.shape_cast %99 : vector<1x8x128xf32> to vector<8x128xf32>
    %101 = arith.addf %97, %100 : vector<8x128xf32>
    %102 = math.tanh %101 : vector<8x128xf32>
    %cst_41 = arith.constant dense<0.000000e+00> : vector<8x128xf32>
    %103 = tpu.matmul %102, %4, %cst_41 {dimension_numbers = #tpu.dot_dimension_numbers<[1], [0], [0], [1], [0, 0, 1, 1], [], []>} : vector<8x128xf32>, vector<128x128xf32>, vector<8x128xf32> -> vector<8x128xf32>
    %104 = arith.index_cast %c5_i32 : i32 to index
    %c0_42 = arith.constant 0 : index
    %c0_43 = arith.constant 0 : index
    %105 = vector.load %arg6[%104, %c0_42, %c0_43] : memref<8x8x128xf32, #tpu.memory_space<vmem>>, vector<1x8x128xf32>
    %106 = vector.shape_cast %105 : vector<1x8x128xf32> to vector<8x128xf32>
    %107 = vector.shape_cast %103 : vector<8x128xf32> to vector<1x8x128xf32>
    tpu.vector_store %arg6[%104, %c0_42, %c0_43], %107 {strides = array<i32>} : memref<8x8x128xf32, #tpu.memory_space<vmem>>, vector<1x8x128xf32>,
    %c6_i32 = arith.constant 6 : i32
    %108 = math.tanh %101 : vector<8x128xf32>
    %cst_44 = arith.constant dense<0.000000e+00> : vector<8x128xf32>
    %109 = tpu.matmul %108, %3, %cst_44 {dimension_numbers = #tpu.dot_dimension_numbers<[1], [0], [0], [1], [0, 0, 1, 1], [], []>} : vector<8x128xf32>, vector<128x128xf32>, vector<8x128xf32> -> vector<8x128xf32>
    %110 = vector.broadcast %cst : f32 to vector<8x128xf32>
    %111 = arith.mulf %110, %101 : vector<8x128xf32>
    %112 = vector.broadcast %cst_6 : f32 to vector<8x128xf32>
    %113 = arith.mulf %112, %109 : vector<8x128xf32>
    %114 = arith.addf %111, %113 : vector<8x128xf32>
    %115 = arith.index_cast %c6_i32 : i32 to index
    %c0_45 = arith.constant 0 : index
    %c0_46 = arith.constant 0 : index
    %116 = vector.load %arg2[%115, %c0_45, %c0_46] : memref<8x8x128xf32, #tpu.memory_space<vmem>>, vector<1x8x128xf32>
    %117 = vector.shape_cast %116 : vector<1x8x128xf32> to vector<8x128xf32>
    %118 = arith.addf %114, %117 : vector<8x128xf32>
    %119 = math.tanh %118 : vector<8x128xf32>
    %cst_47 = arith.constant dense<0.000000e+00> : vector<8x128xf32>
    %120 = tpu.matmul %119, %4, %cst_47 {dimension_numbers = #tpu.dot_dimension_numbers<[1], [0], [0], [1], [0, 0, 1, 1], [], []>} : vector<8x128xf32>, vector<128x128xf32>, vector<8x128xf32> -> vector<8x128xf32>
    %121 = arith.index_cast %c6_i32 : i32 to index
    %c0_48 = arith.constant 0 : index
    %c0_49 = arith.constant 0 : index
    %122 = vector.load %arg6[%121, %c0_48, %c0_49] : memref<8x8x128xf32, #tpu.memory_space<vmem>>, vector<1x8x128xf32>
    %123 = vector.shape_cast %122 : vector<1x8x128xf32> to vector<8x128xf32>
    %124 = vector.shape_cast %120 : vector<8x128xf32> to vector<1x8x128xf32>
    tpu.vector_store %arg6[%121, %c0_48, %c0_49], %124 {strides = array<i32>} : memref<8x8x128xf32, #tpu.memory_space<vmem>>, vector<1x8x128xf32>,
    %c7_i32 = arith.constant 7 : i32
    %125 = math.tanh %118 : vector<8x128xf32>
    %cst_50 = arith.constant dense<0.000000e+00> : vector<8x128xf32>
    %126 = tpu.matmul %125, %3, %cst_50 {dimension_numbers = #tpu.dot_dimension_numbers<[1], [0], [0], [1], [0, 0, 1, 1], [], []>} : vector<8x128xf32>, vector<128x128xf32>, vector<8x128xf32> -> vector<8x128xf32>
    %127 = vector.broadcast %cst : f32 to vector<8x128xf32>
    %128 = arith.mulf %127, %118 : vector<8x128xf32>
    %129 = vector.broadcast %cst_6 : f32 to vector<8x128xf32>
    %130 = arith.mulf %129, %126 : vector<8x128xf32>
    %131 = arith.addf %128, %130 : vector<8x128xf32>
    %132 = arith.index_cast %c7_i32 : i32 to index
    %c0_51 = arith.constant 0 : index
    %c0_52 = arith.constant 0 : index
    %133 = vector.load %arg2[%132, %c0_51, %c0_52] : memref<8x8x128xf32, #tpu.memory_space<vmem>>, vector<1x8x128xf32>
    %134 = vector.shape_cast %133 : vector<1x8x128xf32> to vector<8x128xf32>
    %135 = arith.addf %131, %134 : vector<8x128xf32>
    %136 = math.tanh %135 : vector<8x128xf32>
    %cst_53 = arith.constant dense<0.000000e+00> : vector<8x128xf32>
    %137 = tpu.matmul %136, %4, %cst_53 {dimension_numbers = #tpu.dot_dimension_numbers<[1], [0], [0], [1], [0, 0, 1, 1], [], []>} : vector<8x128xf32>, vector<128x128xf32>, vector<8x128xf32> -> vector<8x128xf32>
    %138 = arith.index_cast %c7_i32 : i32 to index
    %c0_54 = arith.constant 0 : index
    %c0_55 = arith.constant 0 : index
    %139 = vector.load %arg6[%138, %c0_54, %c0_55] : memref<8x8x128xf32, #tpu.memory_space<vmem>>, vector<1x8x128xf32>
    %140 = vector.shape_cast %139 : vector<1x8x128xf32> to vector<8x128xf32>
    %141 = vector.shape_cast %137 : vector<8x128xf32> to vector<1x8x128xf32>
    tpu.vector_store %arg6[%138, %c0_54, %c0_55], %141 {strides = array<i32>} : memref<8x8x128xf32, #tpu.memory_space<vmem>>, vector<1x8x128xf32>,
    %c8_i32 = arith.constant 8 : i32
    %c0_56 = arith.constant 0 : index
    %c0_57 = arith.constant 0 : index
    %142 = vector.load %arg7[%c0_56, %c0_57] : memref<8x128xf32, #tpu.memory_space<vmem>>, vector<8x128xf32>
    tpu.vector_store %arg7[%c0_56, %c0_57], %135 {strides = array<i32>} : memref<8x128xf32, #tpu.memory_space<vmem>>, vector<8x128xf32>,
    return
  }
  func.func @transform_0(%arg0: i32, %arg1: i32) -> (i32, i32, i32) {
    %c0_i32 = arith.constant 0 : i32
    %c0_i32_0 = arith.constant 0 : i32
    return %arg1, %arg0, %c0_i32 : i32, i32, i32
  }
  func.func @transform_1(%arg0: i32, %arg1: i32) -> (i32, i32) {
    %c0_i32 = arith.constant 0 : i32
    %c0_i32_0 = arith.constant 0 : i32
    %c0_i32_1 = arith.constant 0 : i32
    return %c0_i32, %c0_i32_0 : i32, i32
  }
  func.func @transform_2(%arg0: i32, %arg1: i32) -> (i32, i32) {
    %c0_i32 = arith.constant 0 : i32
    %c0_i32_0 = arith.constant 0 : i32
    %c0_i32_1 = arith.constant 0 : i32
    return %c0_i32, %c0_i32_0 : i32, i32
  }
  func.func @transform_3(%arg0: i32, %arg1: i32) -> (i32, i32) {
    %c0_i32 = arith.constant 0 : i32
    %c0_i32_0 = arith.constant 0 : i32
    %c0_i32_1 = arith.constant 0 : i32
    return %c0_i32, %c0_i32_0 : i32, i32
  }
  func.func @transform_4(%arg0: i32, %arg1: i32) -> (i32, i32, i32) {
    %c0_i32 = arith.constant 0 : i32
    %c0_i32_0 = arith.constant 0 : i32
    return %arg1, %arg0, %c0_i32 : i32, i32, i32
  }
}

</mosaic_0001>

<bundles_post_ra>
// kernel: tpu_custom_call.1
= control target key start
LH: loop header
LB: loop body
LE: loop exit
PB: predicated region body
PF: predicated region fallthrough
CT: control target
= control target key end

     0   :  { %9 = vsyncpa [#allocation4], 0  ;;  %s1028_s0 = inlined_call_operand.hbm [shape: f32[8,8,128], index: 0, kind: input, shape index: {}]   ;;  %s1029_s1 = inlined_call_operand.hbm [shape: f32[128,128], index: 1, kind: input, shape index: {}]   ;;  %s1030_s2 = inlined_call_operand.hbm [shape: f32[128,128], index: 2, kind: input, shape index: {}]   ;;  %s1031_s3 = inlined_call_operand.vmem [shape: f32[1,128], index: 3, kind: input, shape index: {}]   ;;  %s1032_s4 = inlined_call_operand.hbm [shape: f32[8,8,128], index: 4, kind: output, shape index: {}]  }
   0x1   :  { %10 = vsyncpa [#allocation7], 0 }
   0x2   :  { %11 = vsyncpa [#allocation5], 0  ;;  %s29_s17 = sshll.u32 %s1029_s1, 4  ;;  %s646_s18 = smov [#allocation6]   ;;  %s30_s17 = int_to_ptr.hbm [resolvable:$true] %s29_s17 }
   0x3   :  { %s31_s19 = sshll.u32 %s646_s18, 4  ;;  %s16_s22 = sshll.u32 %s1028_s0, 4  ;;  %s32_s19 = int_to_ptr.vmem [resolvable:$true] %s31_s19  ;;  %s17_s22 = int_to_ptr.hbm [resolvable:$true] %s16_s22 }
   0x4   :  { %s647_s23 = smov 128   ;;  %s648_s24 = smov 8  }
   0x5   :  { %37 = dma.hbm_to_vmem [thread:$0]  %s30_s17, 2048, %s32_s19, [#allocation7], %s647_s23, %s647_s23, %s648_s24  }
   0x6   :  { %s649_s25 = smov [#allocation3]   ;;  %s42_s1 = sshll.u32 %s1030_s2, 4  ;;  %s43_s1 = int_to_ptr.hbm [resolvable:$true] %s42_s1 }
   0x7   :  { %s18_s26 = sshll.u32 %s649_s25, 4  ;;  %s650_s0 = smov [#allocation8]   ;;  %s19_s26 = int_to_ptr.vmem [resolvable:$true] %s18_s26 }
   0x8   :  { %24 = dma.hbm_to_vmem [thread:$0]  %s17_s22, 1024, %s19_s26, [#allocation4], %s647_s23, %s647_s23, %s648_s24  }
   0x9   :  { %s44_s29 = sshll.u32 %s650_s0, 4  ;;  %s45_s29 = int_to_ptr.vmem [resolvable:$true] %s44_s29 }
   0xa   :  { %50 = dma.hbm_to_vmem [thread:$0]  %s43_s1, 2048, %s45_s29, [#allocation7], %s647_s23, %s647_s23, %s648_s24  }
   0xb   :  { %640 = dma.done.wait [#allocation4], 1024  }
   0xc   :  { %641 = vsyncadd [#allocation4], 4294966272 }
   0xd   :  { %642 = dma.done.wait [#allocation7], 4096  }
   0xe   :  { %643 = vsyncadd [#allocation7], 4294963200  ;;  %v695_v0 = vld [vmem:[#allocation6 + $0x78] sm:$0xff]  ;;  %v697_v1 = vld [vmem:[#allocation6 + $0x70] sm:$0xff]  ;;  %s505_s8 = sshll.u32 %s1032_s4, 4  ;;  %s506_s8 = int_to_ptr.hbm [resolvable:$true] %s505_s8 }
   0xf   :  { %108 = vmatpush.msra.mxu0 %v695_v0  ;;  %155 = vmatpush.msra.mxu2 %v695_v0  ;;  %v701_v2 = vld [vmem:[#allocation6 + $0x68] sm:$0xff]  ;;  %v705_v3 = vld [vmem:[#allocation6 + $0x60] sm:$0xff]  ;;  %v709_v4 = vld [vmem:[#allocation6 + $0x58] sm:$0xff] }
  0x10   :  { %v711_v5 = vld [vmem:[#allocation8 + $0x78] sm:$0xff]  ;;  %v713_v6 = vld [vmem:[#allocation8 + $0x70] sm:$0xff]  ;;  %v719_v8 = vld [vmem:[#allocation8 + $0x68] sm:$0xff] }
  0x11   :  { %109 = vmatpush.msra.mxu0 %v697_v1  ;;  %156 = vmatpush.msra.mxu2 %v697_v1  ;;  %v717_v7 = vld [vmem:[#allocation6 + $0x50] sm:$0xff]  ;;  %v725_v9 = vld [vmem:[#allocation6 + $0x48] sm:$0xff]  ;;  %v727_v10 = vld [vmem:[#allocation8 + $0x60] sm:$0xff] }
  0x12   :  { %134 = vmatpush.msra.mxu1 %v711_v5  ;;  %182 = vmatpush.msra.mxu3 %v711_v5  ;;  %v733_v11 = vld [vmem:[#allocation6 + $0x40] sm:$0xff]  ;;  %v735_v12 = vld [vmem:[#allocation8 + $0x58] sm:$0xff]  ;;  %v743_v14 = vld [vmem:[#allocation8 + $0x50] sm:$0xff] }
  0x13   :  { %110 = vmatpush.msra.mxu0 %v701_v2  ;;  %157 = vmatpush.msra.mxu2 %v701_v2  ;;  %v741_v13 = vld [vmem:[#allocation6 + $0x38] sm:$0xff]  ;;  %v749_v15 = vld [vmem:[#allocation6 + $0x30] sm:$0xff]  ;;  %v751_v16 = vld [vmem:[#allocation8 + $0x48] sm:$0xff] }
  0x14   :  { %135 = vmatpush.msra.mxu1 %v713_v6  ;;  %183 = vmatpush.msra.mxu3 %v713_v6  ;;  %v757_v17 = vld [vmem:[#allocation6 + $0x28] sm:$0xff]  ;;  %v759_v18 = vld [vmem:[#allocation8 + $0x40] sm:$0xff]  ;;  %v772_v21 = vld [vmem:[#allocation8 + $0x38] sm:$0xff] }
  0x15   :  { %111 = vmatpush.msra.mxu0 %v705_v3  ;;  %158 = vmatpush.msra.mxu2 %v705_v3  ;;  %v767_v19 = vld [vmem:[%s1031_s3] ss:$0 sm:$0xff]  ;;  %v778_v22 = vld [vmem:[#allocation6 + $0x18] sm:$0xff]  ;;  %v785_v23 = vld [vmem:[#allocation6 + $0x10] sm:$0xff]  ;;  %s651_s3 = smov [#allocation9]  }
  0x16   :  { %136 = vmatpush.msra.mxu1 %v719_v8  ;;  %184 = vmatpush.msra.mxu3 %v719_v8  ;;  %v770_v20 = vld [vmem:[#allocation6 + $0x20] sm:$0xff]  ;;  %526 = vtanh.f32 %v767_v19  ;;  %v790_v24 = vld [vmem:[#allocation6 + $0x8] sm:$0xff]  ;;  %v849_v27 = vld [vmem:[#allocation8 + $0x30] sm:$0xff]  ;;  %v128_v34 = vmul.f32 0.5, %v767_v19  ;;  %s503_s5 = sshll.u32 %s651_s3, 4  ;;  %s504_s5 = int_to_ptr.vmem [resolvable:$true] %s503_s5 }
  0x17   :  { %112 = vmatpush.msra.mxu0 %v709_v4  ;;  %159 = vmatpush.msra.mxu2 %v709_v4  ;;  %v794_v25 = vld [vmem:[#allocation6] sm:$0xff]  ;;  %v853_v28 = vld [vmem:[#allocation8 + $0x28] sm:$0xff]  ;;  %v860_v30 = vld [vmem:[#allocation8 + $0x18] sm:$0xff] }
  0x18   :  { %137 = vmatpush.msra.mxu1 %v727_v10  ;;  %185 = vmatpush.msra.mxu3 %v727_v10  ;;  %v857_v29 = vld [vmem:[#allocation8 + $0x20] sm:$0xff]  ;;  %v863_v31 = vld [vmem:[#allocation8 + $0x10] sm:$0xff]  ;;  %v867_v32 = vld [vmem:[#allocation8 + $0x8] sm:$0xff] }
  0x19   :  { %113 = vmatpush.msra.mxu0 %v717_v7  ;;  %160 = vmatpush.msra.mxu2 %v717_v7  ;;  %v871_v33 = vld [vmem:[#allocation8] sm:$0xff]  ;;  %v179_v45 = vld [vmem:[#allocation3 + $0x8] sm:$0xff]  ;;  %v228_v52 = vld [vmem:[#allocation3 + $0x10] sm:$0xff] }
  0x1a   :  { %138 = vmatpush.msra.mxu1 %v735_v12  ;;  %186 = vmatpush.msra.mxu3 %v735_v12  ;;  %v131_v37 = vld [vmem:[#allocation3] sm:$0xff]  ;;  %v277_v61 = vld [vmem:[#allocation3 + $0x18] sm:$0xff] }
  0x1b   :  { %114 = vmatpush.msra.mxu0 %v725_v9  ;;  %161 = vmatpush.msra.mxu2 %v725_v9 }
  0x1c   :  { %139 = vmatpush.msra.mxu1 %v743_v14  ;;  %187 = vmatpush.msra.mxu3 %v743_v14  ;;  %v527_v26 = vpop.eup %526 }
  0x1d   :  { %115 = vmatpush.msra.mxu0 %v733_v11  ;;  %162 = vmatpush.msra.mxu2 %v733_v11 }
  0x1e   :  { %140 = vmatpush.msra.mxu1 %v751_v16  ;;  %188 = vmatpush.msra.mxu3 %v751_v16 }
  0x1f   :  { %116 = vmatpush.msra.mxu0 %v741_v13  ;;  %163 = vmatpush.msra.mxu2 %v741_v13 }
  0x20   :  { %141 = vmatpush.msra.mxu1 %v759_v18  ;;  %189 = vmatpush.msra.mxu3 %v759_v18 }
  0x21   :  { %117 = vmatpush.msra.mxu0 %v749_v15  ;;  %164 = vmatpush.msra.mxu2 %v749_v15 }
  0x22   :  { %142 = vmatpush.msra.mxu1 %v772_v21  ;;  %190 = vmatpush.msra.mxu3 %v772_v21 }
  0x23   :  { %118 = vmatpush.msra.mxu0 %v757_v17  ;;  %165 = vmatpush.msra.mxu2 %v757_v17 }
  0x24   :  { %143 = vmatpush.msra.mxu1 %v849_v27  ;;  %191 = vmatpush.msra.mxu3 %v849_v27 }
  0x25   :  { %119 = vmatpush.msra.mxu0 %v770_v20  ;;  %166 = vmatpush.msra.mxu2 %v770_v20 }
  0x26   :  { %144 = vmatpush.msra.mxu1 %v853_v28  ;;  %192 = vmatpush.msra.mxu3 %v853_v28 }
  0x27   :  { %120 = vmatpush.msra.mxu0 %v778_v22  ;;  %167 = vmatpush.msra.mxu2 %v778_v22 }
  0x28   :  { %145 = vmatpush.msra.mxu1 %v857_v29  ;;  %193 = vmatpush.msra.mxu3 %v857_v29 }
  0x29   :  { %121 = vmatpush.msra.mxu0 %v785_v23  ;;  %168 = vmatpush.msra.mxu2 %v785_v23 }
  0x2a   :  { %146 = vmatpush.msra.mxu1 %v860_v30  ;;  %194 = vmatpush.msra.mxu3 %v860_v30 }
  0x2b   :  { %122 = vmatpush.msra.mxu0 %v790_v24  ;;  %169 = vmatpush.msra.mxu2 %v790_v24 }
  0x2c   :  { %147 = vmatpush.msra.mxu1 %v863_v31  ;;  %195 = vmatpush.msra.mxu3 %v863_v31 }
  0x2d   :  { %123 = vmatpush.msra.mxu0 %v794_v25  ;;  %170 = vmatpush.msra.mxu2 %v794_v25 }
  0x2e   :  { %124 = vmatmul.f32.vlgmr.msra.gmra.mxu0 %v527_v26  ;;  %148 = vmatpush.msra.mxu1 %v867_v32 }
  0x2f   :  { %204 = vmatpush.msrb.mxu0 %v695_v0  ;;  %253 = vmatpush.msrb.mxu2 %v695_v0 }
  0x30   :  { %196 = vmatpush.msra.mxu3 %v867_v32  ;;  %149 = vmatpush.msra.mxu1 %v871_v33 }
  0x31   :  { %205 = vmatpush.msrb.mxu0 %v697_v1  ;;  %254 = vmatpush.msrb.mxu2 %v697_v1 }
  0x32   :  { %197 = vmatpush.msra.mxu3 %v871_v33  ;;  %231 = vmatpush.msrb.mxu1 %v711_v5 }
  0x33   :  { %206 = vmatpush.msrb.mxu0 %v701_v2  ;;  %255 = vmatpush.msrb.mxu2 %v701_v2 }
  0x34   :  { %280 = vmatpush.msrb.mxu3 %v711_v5  ;;  %232 = vmatpush.msrb.mxu1 %v713_v6 }
  0x35   :  { %207 = vmatpush.msrb.mxu0 %v705_v3  ;;  %256 = vmatpush.msrb.mxu2 %v705_v3 }
  0x36   :  { %281 = vmatpush.msrb.mxu3 %v713_v6  ;;  %233 = vmatpush.msrb.mxu1 %v719_v8 }
  0x37   :  { %208 = vmatpush.msrb.mxu0 %v709_v4  ;;  %257 = vmatpush.msrb.mxu2 %v709_v4 }
  0x38   :  { %282 = vmatpush.msrb.mxu3 %v719_v8  ;;  %234 = vmatpush.msrb.mxu1 %v727_v10 }
  0x39   :  { %209 = vmatpush.msrb.mxu0 %v717_v7  ;;  %258 = vmatpush.msrb.mxu2 %v717_v7 }
  0x3a   :  { %283 = vmatpush.msrb.mxu3 %v727_v10  ;;  %235 = vmatpush.msrb.mxu1 %v735_v12 }
  0x3b   :  { %210 = vmatpush.msrb.mxu0 %v725_v9  ;;  %259 = vmatpush.msrb.mxu2 %v725_v9 }
  0x3c   :  { %284 = vmatpush.msrb.mxu3 %v735_v12  ;;  %236 = vmatpush.msrb.mxu1 %v743_v14 }
  0x3d   :  { %211 = vmatpush.msrb.mxu0 %v733_v11  ;;  %260 = vmatpush.msrb.mxu2 %v733_v11 }
  0x3e   :  { %285 = vmatpush.msrb.mxu3 %v743_v14  ;;  %237 = vmatpush.msrb.mxu1 %v751_v16 }
  0x3f   :  { %212 = vmatpush.msrb.mxu0 %v741_v13  ;;  %261 = vmatpush.msrb.mxu2 %v741_v13 }
  0x40   :  { %286 = vmatpush.msrb.mxu3 %v751_v16  ;;  %238 = vmatpush.msrb.mxu1 %v759_v18 }
  0x41   :  { %213 = vmatpush.msrb.mxu0 %v749_v15  ;;  %262 = vmatpush.msrb.mxu2 %v749_v15 }
  0x42   :  { %287 = vmatpush.msrb.mxu3 %v759_v18  ;;  %239 = vmatpush.msrb.mxu1 %v772_v21 }
  0x43   :  { %214 = vmatpush.msrb.mxu0 %v757_v17  ;;  %263 = vmatpush.msrb.mxu2 %v757_v17 }
  0x44   :  { %288 = vmatpush.msrb.mxu3 %v772_v21  ;;  %240 = vmatpush.msrb.mxu1 %v849_v27 }
  0x45   :  { %215 = vmatpush.msrb.mxu0 %v770_v20  ;;  %264 = vmatpush.msrb.mxu2 %v770_v20 }
  0x46   :  { %289 = vmatpush.msrb.mxu3 %v849_v27  ;;  %241 = vmatpush.msrb.mxu1 %v853_v28 }
  0x47   :  { %216 = vmatpush.msrb.mxu0 %v778_v22  ;;  %265 = vmatpush.msrb.mxu2 %v778_v22 }
  0x48   :  { %290 = vmatpush.msrb.mxu3 %v853_v28  ;;  %242 = vmatpush.msrb.mxu1 %v857_v29 }
  0x49   :  { %217 = vmatpush.msrb.mxu0 %v785_v23  ;;  %266 = vmatpush.msrb.mxu2 %v785_v23 }
  0x4a   :  { %291 = vmatpush.msrb.mxu3 %v857_v29  ;;  %243 = vmatpush.msrb.mxu1 %v860_v30 }
  0x4b   :  { %218 = vmatpush.msrb.mxu0 %v790_v24  ;;  %267 = vmatpush.msrb.mxu2 %v790_v24 }
  0x4c   :  { %292 = vmatpush.msrb.mxu3 %v860_v30  ;;  %244 = vmatpush.msrb.mxu1 %v863_v31 }
  0x4d   :  { %219 = vmatpush.msrb.mxu0 %v794_v25  ;;  %268 = vmatpush.msrb.mxu2 %v794_v25 }
  0x4e   :  { %293 = vmatpush.msrb.mxu3 %v863_v31  ;;  %245 = vmatpush.msrb.mxu1 %v867_v32 }
  0x4f   :  { %302 = vmatpush.msra.mxu0 %v695_v0 }
  0x50   :  { %294 = vmatpush.msrb.mxu3 %v867_v32  ;;  %246 = vmatpush.msrb.mxu1 %v871_v33 }
  0x51   :  { %303 = vmatpush.msra.mxu0 %v697_v1 }
  0x52   :  { %295 = vmatpush.msrb.mxu3 %v871_v33 }
  0x53   :  { %304 = vmatpush.msra.mxu0 %v701_v2 }
  0x55   :  { %305 = vmatpush.msra.mxu0 %v705_v3 }
  0x57   :  { %306 = vmatpush.msra.mxu0 %v709_v4 }
  0x59   :  { %307 = vmatpush.msra.mxu0 %v717_v7 }
  0x5b   :  { %308 = vmatpush.msra.mxu0 %v725_v9 }
  0x5d   :  { %309 = vmatpush.msra.mxu0 %v733_v11 }
  0x5f   :  { %310 = vmatpush.msra.mxu0 %v741_v13 }
  0x61   :  { %311 = vmatpush.msra.mxu0 %v749_v15 }
  0x63   :  { %312 = vmatpush.msra.mxu0 %v757_v17 }
  0x65   :  { %313 = vmatpush.msra.mxu0 %v770_v20 }
  0x67   :  { %314 = vmatpush.msra.mxu0 %v778_v22 }
  0x69   :  { %315 = vmatpush.msra.mxu0 %v785_v23 }
  0x6b   :  { %316 = vmatpush.msra.mxu0 %v790_v24 }
  0x6d   :  { %317 = vmatpush.msra.mxu0 %v794_v25 }
  0xab   :  { %v125_v35 = vpop.f32.mrf.mxu0 }
  0xac   :  { %v129_v36 = vmul.f32 0.5, %v125_v35 }
  0xae   :  { %v130_v38 = vadd.f32 %v129_v36, %v128_v34 }
  0xb0   :  { %v132_v39 = vadd.f32 %v131_v37, %v130_v38 }
  0xb2   :  { %528 = vtanh.f32 %v132_v39  ;;  %v175_v43 = vmul.f32 0.5, %v132_v39 }
  0xb8   :  { %v529_v40 = vpop.eup %528 }
  0xb9   :  { %150 = vmatmul.f32.vlgmr.msra.gmra.mxu1 %v529_v40  ;;  %171 = vmatmul.f32.vlgmr.msra.gmra.mxu2 %v529_v40 }
  0xba   :  { %329 = vmatpush.msra.mxu1 %v711_v5  ;;  %351 = vmatpush.msra.mxu2 %v695_v0 }
  0xbc   :  { %330 = vmatpush.msra.mxu1 %v713_v6  ;;  %352 = vmatpush.msra.mxu2 %v697_v1 }
  0xbe   :  { %331 = vmatpush.msra.mxu1 %v719_v8  ;;  %353 = vmatpush.msra.mxu2 %v701_v2 }
  0xc0   :  { %332 = vmatpush.msra.mxu1 %v727_v10  ;;  %354 = vmatpush.msra.mxu2 %v705_v3 }
  0xc2   :  { %333 = vmatpush.msra.mxu1 %v735_v12  ;;  %355 = vmatpush.msra.mxu2 %v709_v4 }
  0xc4   :  { %334 = vmatpush.msra.mxu1 %v743_v14  ;;  %356 = vmatpush.msra.mxu2 %v717_v7 }
  0xc6   :  { %335 = vmatpush.msra.mxu1 %v751_v16  ;;  %357 = vmatpush.msra.mxu2 %v725_v9 }
  0xc8   :  { %336 = vmatpush.msra.mxu1 %v759_v18  ;;  %358 = vmatpush.msra.mxu2 %v733_v11 }
  0xca   :  { %337 = vmatpush.msra.mxu1 %v772_v21  ;;  %359 = vmatpush.msra.mxu2 %v741_v13 }
  0xcc   :  { %338 = vmatpush.msra.mxu1 %v849_v27  ;;  %360 = vmatpush.msra.mxu2 %v749_v15 }
  0xce   :  { %339 = vmatpush.msra.mxu1 %v853_v28  ;;  %361 = vmatpush.msra.mxu2 %v757_v17 }
  0xd0   :  { %340 = vmatpush.msra.mxu1 %v857_v29  ;;  %362 = vmatpush.msra.mxu2 %v770_v20 }
  0xd2   :  { %341 = vmatpush.msra.mxu1 %v860_v30  ;;  %363 = vmatpush.msra.mxu2 %v778_v22 }
  0xd4   :  { %342 = vmatpush.msra.mxu1 %v863_v31  ;;  %364 = vmatpush.msra.mxu2 %v785_v23 }
  0xd6   :  { %343 = vmatpush.msra.mxu1 %v867_v32  ;;  %365 = vmatpush.msra.mxu2 %v790_v24 }
  0xd8   :  { %344 = vmatpush.msra.mxu1 %v871_v33  ;;  %366 = vmatpush.msra.mxu2 %v794_v25 }
 0x136   :  { %v151_v41 = vpop.f32.mrf.mxu1 }
 0x137   :  { %154 = vst [vmem:[#allocation9] sm:$0xff] %v151_v41 }
 0x13c   :  { %v172_v42 = vpop.f32.mrf.mxu2 }
 0x13d   :  { %v176_v44 = vmul.f32 0.5, %v172_v42 }
 0x13f   :  { %v177_v46 = vadd.f32 %v176_v44, %v175_v43 }
 0x141   :  { %v180_v47 = vadd.f32 %v179_v45, %v177_v46 }
 0x143   :  { %530 = vtanh.f32 %v180_v47  ;;  %v224_v50 = vmul.f32 0.5, %v180_v47 }
 0x149   :  { %v531_v48 = vpop.eup %530 }
 0x14a   :  { %198 = vmatmul.f32.vlgmr.msra.gmra.mxu3 %v531_v48  ;;  %220 = vmatmul.f32.vlgmr.msrb.gmra.mxu0 %v531_v48 }
 0x14b   :  { %378 = vmatpush.msra.mxu3 %v711_v5  ;;  %400 = vmatpush.msrb.mxu0 %v695_v0 }
 0x14d   :  { %379 = vmatpush.msra.mxu3 %v713_v6  ;;  %401 = vmatpush.msrb.mxu0 %v697_v1 }
 0x14f   :  { %380 = vmatpush.msra.mxu3 %v719_v8  ;;  %402 = vmatpush.msrb.mxu0 %v701_v2 }
 0x151   :  { %381 = vmatpush.msra.mxu3 %v727_v10  ;;  %403 = vmatpush.msrb.mxu0 %v705_v3 }
 0x153   :  { %382 = vmatpush.msra.mxu3 %v735_v12  ;;  %404 = vmatpush.msrb.mxu0 %v709_v4 }
 0x155   :  { %383 = vmatpush.msra.mxu3 %v743_v14  ;;  %405 = vmatpush.msrb.mxu0 %v717_v7 }
 0x157   :  { %384 = vmatpush.msra.mxu3 %v751_v16  ;;  %406 = vmatpush.msrb.mxu0 %v725_v9 }
 0x159   :  { %385 = vmatpush.msra.mxu3 %v759_v18  ;;  %407 = vmatpush.msrb.mxu0 %v733_v11 }
 0x15b   :  { %386 = vmatpush.msra.mxu3 %v772_v21  ;;  %408 = vmatpush.msrb.mxu0 %v741_v13 }
 0x15d   :  { %387 = vmatpush.msra.mxu3 %v849_v27  ;;  %409 = vmatpush.msrb.mxu0 %v749_v15 }
 0x15f   :  { %388 = vmatpush.msra.mxu3 %v853_v28  ;;  %410 = vmatpush.msrb.mxu0 %v757_v17 }
 0x161   :  { %389 = vmatpush.msra.mxu3 %v857_v29  ;;  %411 = vmatpush.msrb.mxu0 %v770_v20 }
 0x163   :  { %390 = vmatpush.msra.mxu3 %v860_v30  ;;  %412 = vmatpush.msrb.mxu0 %v778_v22 }
 0x165   :  { %391 = vmatpush.msra.mxu3 %v863_v31  ;;  %413 = vmatpush.msrb.mxu0 %v785_v23 }
 0x167   :  { %392 = vmatpush.msra.mxu3 %v867_v32  ;;  %414 = vmatpush.msrb.mxu0 %v790_v24 }
 0x169   :  { %393 = vmatpush.msra.mxu3 %v871_v33  ;;  %415 = vmatpush.msrb.mxu0 %v794_v25 }
 0x1c7   :  { %v221_v49 = vpop.f32.mrf.mxu0 }
 0x1c8   :  { %v225_v51 = vmul.f32 0.5, %v221_v49 }
 0x1ca   :  { %v226_v53 = vadd.f32 %v225_v51, %v224_v50 }
 0x1cc   :  { %v229_v54 = vadd.f32 %v228_v52, %v226_v53 }
 0x1cd   :  { %v199_v55 = vpop.f32.mrf.mxu3 }
 0x1ce   :  { %532 = vtanh.f32 %v229_v54  ;;  %203 = vst [vmem:[#allocation9 + $0x8] sm:$0xff] %v199_v55  ;;  %v273_v59 = vmul.f32 0.5, %v229_v54 }
 0x1d4   :  { %v533_v56 = vpop.eup %532 }
 0x1d5   :  { %247 = vmatmul.f32.vlgmr.msrb.gmra.mxu1 %v533_v56  ;;  %269 = vmatmul.f32.vlgmr.msrb.gmra.mxu2 %v533_v56 }
 0x1d6   :  { %427 = vmatpush.msrb.mxu1 %v711_v5  ;;  %449 = vmatpush.msrb.mxu2 %v695_v0 }
 0x1d8   :  { %428 = vmatpush.msrb.mxu1 %v713_v6  ;;  %450 = vmatpush.msrb.mxu2 %v697_v1 }
 0x1da   :  { %429 = vmatpush.msrb.mxu1 %v719_v8  ;;  %451 = vmatpush.msrb.mxu2 %v701_v2 }
 0x1dc   :  { %430 = vmatpush.msrb.mxu1 %v727_v10  ;;  %452 = vmatpush.msrb.mxu2 %v705_v3 }
 0x1de   :  { %431 = vmatpush.msrb.mxu1 %v735_v12  ;;  %453 = vmatpush.msrb.mxu2 %v709_v4  ;;  %v326_v4 = vld [vmem:[#allocation3 + $0x20] sm:$0xff] }
 0x1e0   :  { %432 = vmatpush.msrb.mxu1 %v743_v14  ;;  %454 = vmatpush.msrb.mxu2 %v717_v7 }
 0x1e2   :  { %433 = vmatpush.msrb.mxu1 %v751_v16  ;;  %455 = vmatpush.msrb.mxu2 %v725_v9 }
 0x1e4   :  { %434 = vmatpush.msrb.mxu1 %v759_v18  ;;  %456 = vmatpush.msrb.mxu2 %v733_v11 }
 0x1e6   :  { %435 = vmatpush.msrb.mxu1 %v772_v21  ;;  %457 = vmatpush.msrb.mxu2 %v741_v13  ;;  %v375_v13 = vld [vmem:[#allocation3 + $0x28] sm:$0xff] }
 0x1e8   :  { %436 = vmatpush.msrb.mxu1 %v849_v27  ;;  %458 = vmatpush.msrb.mxu2 %v749_v15 }
 0x1ea   :  { %437 = vmatpush.msrb.mxu1 %v853_v28  ;;  %459 = vmatpush.msrb.mxu2 %v757_v17 }
 0x1ec   :  { %438 = vmatpush.msrb.mxu1 %v857_v29  ;;  %460 = vmatpush.msrb.mxu2 %v770_v20  ;;  %v424_v20 = vld [vmem:[#allocation3 + $0x30] sm:$0xff] }
 0x1ee   :  { %439 = vmatpush.msrb.mxu1 %v860_v30  ;;  %461 = vmatpush.msrb.mxu2 %v778_v22 }
 0x1f0   :  { %440 = vmatpush.msrb.mxu1 %v863_v31  ;;  %462 = vmatpush.msrb.mxu2 %v785_v23 }
 0x1f2   :  { %441 = vmatpush.msrb.mxu1 %v867_v32  ;;  %463 = vmatpush.msrb.mxu2 %v790_v24 }
 0x1f4   :  { %442 = vmatpush.msrb.mxu1 %v871_v33  ;;  %464 = vmatpush.msrb.mxu2 %v794_v25 }
 0x252   :  { %v248_v57 = vpop.f32.mrf.mxu1 }
 0x253   :  { %252 = vst [vmem:[#allocation9 + $0x10] sm:$0xff] %v248_v57 }
 0x258   :  { %v270_v58 = vpop.f32.mrf.mxu2 }
 0x259   :  { %v274_v60 = vmul.f32 0.5, %v270_v58 }
 0x25b   :  { %v275_v62 = vadd.f32 %v274_v60, %v273_v59 }
 0x25d   :  { %v278_v63 = vadd.f32 %v277_v61, %v275_v62 }
 0x25f   :  { %534 = vtanh.f32 %v278_v63  ;;  %v322_v2 = vmul.f32 0.5, %v278_v63 }
 0x265   :  { %v535_v0 = vpop.eup %534 }
 0x266   :  { %296 = vmatmul.f32.vlgmr.msrb.gmra.mxu3 %v535_v0  ;;  %318 = vmatmul.f32.vlgmr.msra.gmra.mxu0 %v535_v0 }
 0x267   :  { %476 = vmatpush.msrb.mxu3 %v711_v5 }
 0x269   :  { %477 = vmatpush.msrb.mxu3 %v713_v6 }
 0x26b   :  { %478 = vmatpush.msrb.mxu3 %v719_v8 }
 0x26d   :  { %479 = vmatpush.msrb.mxu3 %v727_v10 }
 0x26f   :  { %480 = vmatpush.msrb.mxu3 %v735_v12 }
 0x271   :  { %481 = vmatpush.msrb.mxu3 %v743_v14 }
 0x273   :  { %482 = vmatpush.msrb.mxu3 %v751_v16 }
 0x275   :  { %483 = vmatpush.msrb.mxu3 %v759_v18 }
 0x277   :  { %484 = vmatpush.msrb.mxu3 %v772_v21 }
 0x279   :  { %485 = vmatpush.msrb.mxu3 %v849_v27 }
 0x27b   :  { %486 = vmatpush.msrb.mxu3 %v853_v28 }
 0x27d   :  { %487 = vmatpush.msrb.mxu3 %v857_v29  ;;  %v473_v29 = vld [vmem:[#allocation3 + $0x38] sm:$0xff] }
 0x27f   :  { %488 = vmatpush.msrb.mxu3 %v860_v30 }
 0x281   :  { %489 = vmatpush.msrb.mxu3 %v863_v31 }
 0x283   :  { %490 = vmatpush.msrb.mxu3 %v867_v32 }
 0x285   :  { %491 = vmatpush.msrb.mxu3 %v871_v33 }
 0x2e3   :  { %v319_v1 = vpop.f32.mrf.mxu0 }
 0x2e4   :  { %v323_v3 = vmul.f32 0.5, %v319_v1 }
 0x2e6   :  { %v324_v5 = vadd.f32 %v323_v3, %v322_v2 }
 0x2e8   :  { %v327_v6 = vadd.f32 %v326_v4, %v324_v5 }
 0x2e9   :  { %v297_v7 = vpop.f32.mrf.mxu3 }
 0x2ea   :  { %536 = vtanh.f32 %v327_v6  ;;  %301 = vst [vmem:[#allocation9 + $0x18] sm:$0xff] %v297_v7  ;;  %v371_v11 = vmul.f32 0.5, %v327_v6 }
 0x2f0   :  { %v537_v8 = vpop.eup %536 }
 0x2f1   :  { %345 = vmatmul.f32.vlgmr.msra.gmra.mxu1 %v537_v8  ;;  %367 = vmatmul.f32.vlgmr.msra.gmra.mxu2 %v537_v8 }
 0x36e   :  { %v346_v9 = vpop.f32.mrf.mxu1 }
 0x36f   :  { %350 = vst [vmem:[#allocation9 + $0x20] sm:$0xff] %v346_v9 }
 0x374   :  { %v368_v10 = vpop.f32.mrf.mxu2 }
 0x375   :  { %v372_v12 = vmul.f32 0.5, %v368_v10 }
 0x377   :  { %v373_v14 = vadd.f32 %v372_v12, %v371_v11 }
 0x379   :  { %v376_v15 = vadd.f32 %v375_v13, %v373_v14 }
 0x37b   :  { %538 = vtanh.f32 %v376_v15  ;;  %v420_v18 = vmul.f32 0.5, %v376_v15 }
 0x381   :  { %v539_v16 = vpop.eup %538 }
 0x382   :  { %394 = vmatmul.f32.vlgmr.msra.gmra.mxu3 %v539_v16  ;;  %416 = vmatmul.f32.vlgmr.msrb.gmra.mxu0 %v539_v16 }
 0x3ff   :  { %v417_v17 = vpop.f32.mrf.mxu0 }
 0x400   :  { %v421_v19 = vmul.f32 0.5, %v417_v17 }
 0x402   :  { %v422_v21 = vadd.f32 %v421_v19, %v420_v18 }
 0x404   :  { %v425_v22 = vadd.f32 %v424_v20, %v422_v21 }
 0x405   :  { %v395_v23 = vpop.f32.mrf.mxu3 }
 0x406   :  { %540 = vtanh.f32 %v425_v22  ;;  %399 = vst [vmem:[#allocation9 + $0x28] sm:$0xff] %v395_v23  ;;  %v469_v27 = vmul.f32 0.5, %v425_v22 }
 0x40c   :  { %v541_v24 = vpop.eup %540 }
 0x40d   :  { %443 = vmatmul.f32.vlgmr.msrb.gmra.mxu1 %v541_v24  ;;  %465 = vmatmul.f32.vlgmr.msrb.gmra.mxu2 %v541_v24 }
 0x48a   :  { %v444_v25 = vpop.f32.mrf.mxu1 }
 0x48b   :  { %448 = vst [vmem:[#allocation9 + $0x30] sm:$0xff] %v444_v25 }
 0x490   :  { %v466_v26 = vpop.f32.mrf.mxu2 }
 0x491   :  { %v470_v28 = vmul.f32 0.5, %v466_v26 }
 0x493   :  { %v471_v30 = vadd.f32 %v470_v28, %v469_v27 }
 0x495   :  { %v474_v31 = vadd.f32 %v473_v29, %v471_v30 }
 0x497   :  { %542 = vtanh.f32 %v474_v31 }
 0x49d   :  { %v543_v32 = vpop.eup %542 }
 0x49e   :  { %492 = vmatmul.f32.vlgmr.msrb.gmra.mxu3 %v543_v32 }
 0x521   :  { %v493_v33 = vpop.f32.mrf.mxu3 }
 0x522   :  { %497 = vst [vmem:[#allocation9 + $0x38] sm:$0xff] %v493_v33 }
 0x523   :  { %511 = dma.vmem_to_hbm [thread:$0]  %s504_s5, 1024, %s506_s8, [#allocation5], %s647_s23, %s647_s23, %s648_s24  }
 0x524   :  { %644 = dma.done.wait [#allocation5], 1024  }
 0x525   :  { %645 = vsyncadd [#allocation5], 4294966272 }
 0x526   :  { %516 = vsyncpa [#allocation4], 1 }
 0x527   :  { %517 = vsyncpa [#allocation7], 1 }
 0x528   :  { %518 = vsyncpa [#allocation5], 1 }

// kernel: tpu_custom_call.1
= control target key start
LH: loop header
LB: loop body
LE: loop exit
PB: predicated region body
PF: predicated region fallthrough
CT: control target
= control target key end

     0   :  { %9 = vsyncpa [#allocation4], 0  ;;  %s1028_s0 = inlined_call_operand.hbm [shape: f32[8,8,128], index: 0, kind: input, shape index: {}]   ;;  %s1029_s1 = inlined_call_operand.hbm [shape: f32[128,128], index: 1, kind: input, shape index: {}]   ;;  %s1030_s2 = inlined_call_operand.hbm [shape: f32[128,128], index: 2, kind: input, shape index: {}]   ;;  %s1031_s3 = inlined_call_operand.vmem [shape: f32[1,128], index: 3, kind: input, shape index: {}]   ;;  %s1032_s4 = inlined_call_operand.hbm [shape: f32[8,8,128], index: 4, kind: output, shape index: {}]  }
   0x1   :  { %10 = vsyncpa [#allocation7], 0 }
   0x2   :  { %11 = vsyncpa [#allocation5], 0  ;;  %s29_s17 = sshll.u32 %s1029_s1, 4  ;;  %s646_s18 = smov [#allocation6]   ;;  %s30_s17 = int_to_ptr.hbm [resolvable:$true] %s29_s17 }
   0x3   :  { %s31_s19 = sshll.u32 %s646_s18, 4  ;;  %s16_s22 = sshll.u32 %s1028_s0, 4  ;;  %s32_s19 = int_to_ptr.vmem [resolvable:$true] %s31_s19  ;;  %s17_s22 = int_to_ptr.hbm [resolvable:$true] %s16_s22 }
   0x4   :  { %s647_s23 = smov 128   ;;  %s648_s24 = smov 8  }
   0x5   :  { %37 = dma.hbm_to_vmem [thread:$0]  %s30_s17, 2048, %s32_s19, [#allocation7], %s647_s23, %s647_s23, %s648_s24  }
   0x6   :  { %s649_s25 = smov [#allocation3]   ;;  %s42_s1 = sshll.u32 %s1030_s2, 4  ;;  %s43_s1 = int_to_ptr.hbm [resolvable:$true] %s42_s1 }
   0x7   :  { %s18_s26 = sshll.u32 %s649_s25, 4  ;;  %s650_s0 = smov [#allocation8]   ;;  %s19_s26 = int_to_ptr.vmem [resolvable:$true] %s18_s26 }
   0x8   :  { %24 = dma.hbm_to_vmem [thread:$0]  %s17_s22, 1024, %s19_s26, [#allocation4], %s647_s23, %s647_s23, %s648_s24  }
   0x9   :  { %s44_s29 = sshll.u32 %s650_s0, 4  ;;  %s45_s29 = int_to_ptr.vmem [resolvable:$true] %s44_s29 }
   0xa   :  { %50 = dma.hbm_to_vmem [thread:$0]  %s43_s1, 2048, %s45_s29, [#allocation7], %s647_s23, %s647_s23, %s648_s24  }
   0xb   :  { %640 = dma.done.wait [#allocation4], 1024  }
   0xc   :  { %641 = vsyncadd [#allocation4], 4294966272 }
   0xd   :  { %642 = dma.done.wait [#allocation7], 4096  }
   0xe   :  { %643 = vsyncadd [#allocation7], 4294963200  ;;  %v695_v0 = vld [vmem:[#allocation6 + $0x78] sm:$0xff]  ;;  %v697_v1 = vld [vmem:[#allocation6 + $0x70] sm:$0xff]  ;;  %s505_s8 = sshll.u32 %s1032_s4, 4  ;;  %s506_s8 = int_to_ptr.hbm [resolvable:$true] %s505_s8 }
   0xf   :  { %108 = vmatpush.msra.mxu0 %v695_v0  ;;  %155 = vmatpush.msra.mxu2 %v695_v0  ;;  %v701_v2 = vld [vmem:[#allocation6 + $0x68] sm:$0xff]  ;;  %v705_v3 = vld [vmem:[#allocation6 + $0x60] sm:$0xff]  ;;  %v709_v4 = vld [vmem:[#allocation6 + $0x58] sm:$0xff] }
  0x10   :  { %v711_v5 = vld [vmem:[#allocation8 + $0x78] sm:$0xff]  ;;  %v713_v6 = vld [vmem:[#allocation8 + $0x70] sm:$0xff]  ;;  %v719_v8 = vld [vmem:[#allocation8 + $0x68] sm:$0xff] }
  0x11   :  { %109 = vmatpush.msra.mxu0 %v697_v1  ;;  %156 = vmatpush.msra.mxu2 %v697_v1  ;;  %v717_v7 = vld [vmem:[#allocation6 + $0x50] sm:$0xff]  ;;  %v725_v9 = vld [vmem:[#allocation6 + $0x48] sm:$0xff]  ;;  %v727_v10 = vld [vmem:[#allocation8 + $0x60] sm:$0xff] }
  0x12   :  { %134 = vmatpush.msra.mxu1 %v711_v5  ;;  %182 = vmatpush.msra.mxu3 %v711_v5  ;;  %v733_v11 = vld [vmem:[#allocation6 + $0x40] sm:$0xff]  ;;  %v735_v12 = vld [vmem:[#allocation8 + $0x58] sm:$0xff]  ;;  %v743_v14 = vld [vmem:[#allocation8 + $0x50] sm:$0xff] }
  0x13   :  { %110 = vmatpush.msra.mxu0 %v701_v2  ;;  %157 = vmatpush.msra.mxu2 %v701_v2  ;;  %v741_v13 = vld [vmem:[#allocation6 + $0x38] sm:$0xff]  ;;  %v749_v15 = vld [vmem:[#allocation6 + $0x30] sm:$0xff]  ;;  %v751_v16 = vld [vmem:[#allocation8 + $0x48] sm:$0xff] }
  0x14   :  { %135 = vmatpush.msra.mxu1 %v713_v6  ;;  %183 = vmatpush.msra.mxu3 %v713_v6  ;;  %v757_v17 = vld [vmem:[#allocation6 + $0x28] sm:$0xff]  ;;  %v759_v18 = vld [vmem:[#allocation8 + $0x40] sm:$0xff]  ;;  %v772_v21 = vld [vmem:[#allocation8 + $0x38] sm:$0xff] }
  0x15   :  { %111 = vmatpush.msra.mxu0 %v705_v3  ;;  %158 = vmatpush.msra.mxu2 %v705_v3  ;;  %v767_v19 = vld [vmem:[%s1031_s3] ss:$0 sm:$0xff]  ;;  %v778_v22 = vld [vmem:[#allocation6 + $0x18] sm:$0xff]  ;;  %v785_v23 = vld [vmem:[#allocation6 + $0x10] sm:$0xff]  ;;  %s651_s3 = smov [#allocation9]  }
  0x16   :  { %136 = vmatpush.msra.mxu1 %v719_v8  ;;  %184 = vmatpush.msra.mxu3 %v719_v8  ;;  %v770_v20 = vld [vmem:[#allocation6 + $0x20] sm:$0xff]  ;;  %526 = vtanh.f32 %v767_v19  ;;  %v790_v24 = vld [vmem:[#allocation6 + $0x8] sm:$0xff]  ;;  %v849_v27 = vld [vmem:[#allocation8 + $0x30] sm:$0xff]  ;;  %v128_v34 = vmul.f32 0.5, %v767_v19  ;;  %s503_s5 = sshll.u32 %s651_s3, 4  ;;  %s504_s5 = int_to_ptr.vmem [resolvable:$true] %s503_s5 }
  0x17   :  { %112 = vmatpush.msra.mxu0 %v709_v4  ;;  %159 = vmatpush.msra.mxu2 %v709_v4  ;;  %v794_v25 = vld [vmem:[#allocation6] sm:$0xff]  ;;  %v853_v28 = vld [vmem:[#allocation8 + $0x28] sm:$0xff]  ;;  %v860_v30 = vld [vmem:[#allocation8 + $0x18] sm:$0xff] }
  0x18   :  { %137 = vmatpush.msra.mxu1 %v727_v10  ;;  %185 = vmatpush.msra.mxu3 %v727_v10  ;;  %v857_v29 = vld [vmem:[#allocation8 + $0x20] sm:$0xff]  ;;  %v863_v31 = vld [vmem:[#allocation8 + $0x10] sm:$0xff]  ;;  %v867_v32 = vld [vmem:[#allocation8 + $0x8] sm:$0xff] }
  0x19   :  { %113 = vmatpush.msra.mxu0 %v717_v7  ;;  %160 = vmatpush.msra.mxu2 %v717_v7  ;;  %v871_v33 = vld [vmem:[#allocation8] sm:$0xff]  ;;  %v179_v45 = vld [vmem:[#allocation3 + $0x8] sm:$0xff]  ;;  %v228_v52 = vld [vmem:[#allocation3 + $0x10] sm:$0xff] }
  0x1a   :  { %138 = vmatpush.msra.mxu1 %v735_v12  ;;  %186 = vmatpush.msra.mxu3 %v735_v12  ;;  %v131_v37 = vld [vmem:[#allocation3] sm:$0xff]  ;;  %v277_v61 = vld [vmem:[#allocation3 + $0x18] sm:$0xff] }
  0x1b   :  { %114 = vmatpush.msra.mxu0 %v725_v9  ;;  %161 = vmatpush.msra.mxu2 %v725_v9 }
  0x1c   :  { %139 = vmatpush.msra.mxu1 %v743_v14  ;;  %187 = vmatpush.msra.mxu3 %v743_v14  ;;  %v527_v26 = vpop.eup %526 }
  0x1d   :  { %115 = vmatpush.msra.mxu0 %v733_v11  ;;  %162 = vmatpush.msra.mxu2 %v733_v11 }
  0x1e   :  { %140 = vmatpush.msra.mxu1 %v751_v16  ;;  %188 = vmatpush.msra.mxu3 %v751_v16 }
  0x1f   :  { %116 = vmatpush.msra.mxu0 %v741_v13  ;;  %163 = vmatpush.msra.mxu2 %v741_v13 }
  0x20   :  { %141 = vmatpush.msra.mxu1 %v759_v18  ;;  %189 = vmatpush.msra.mxu3 %v759_v18 }
  0x21   :  { %117 = vmatpush.msra.mxu0 %v749_v15  ;;  %164 = vmatpush.msra.mxu2 %v749_v15 }
  0x22   :  { %142 = vmatpush.msra.mxu1 %v772_v21  ;;  %190 = vmatpush.msra.mxu3 %v772_v21 }
  0x23   :  { %118 = vmatpush.msra.mxu0 %v757_v17  ;;  %165 = vmatpush.msra.mxu2 %v757_v17 }
  0x24   :  { %143 = vmatpush.msra.mxu1 %v849_v27  ;;  %191 = vmatpush.msra.mxu3 %v849_v27 }
  0x25   :  { %119 = vmatpush.msra.mxu0 %v770_v20  ;;  %166 = vmatpush.msra.mxu2 %v770_v20 }
  0x26   :  { %144 = vmatpush.msra.mxu1 %v853_v28  ;;  %192 = vmatpush.msra.mxu3 %v853_v28 }
  0x27   :  { %120 = vmatpush.msra.mxu0 %v778_v22  ;;  %167 = vmatpush.msra.mxu2 %v778_v22 }
  0x28   :  { %145 = vmatpush.msra.mxu1 %v857_v29  ;;  %193 = vmatpush.msra.mxu3 %v857_v29 }
  0x29   :  { %121 = vmatpush.msra.mxu0 %v785_v23  ;;  %168 = vmatpush.msra.mxu2 %v785_v23 }
  0x2a   :  { %146 = vmatpush.msra.mxu1 %v860_v30  ;;  %194 = vmatpush.msra.mxu3 %v860_v30 }
  0x2b   :  { %122 = vmatpush.msra.mxu0 %v790_v24  ;;  %169 = vmatpush.msra.mxu2 %v790_v24 }
  0x2c   :  { %147 = vmatpush.msra.mxu1 %v863_v31  ;;  %195 = vmatpush.msra.mxu3 %v863_v31 }
  0x2d   :  { %123 = vmatpush.msra.mxu0 %v794_v25  ;;  %170 = vmatpush.msra.mxu2 %v794_v25 }
  0x2e   :  { %124 = vmatmul.f32.vlgmr.msra.gmra.mxu0 %v527_v26  ;;  %148 = vmatpush.msra.mxu1 %v867_v32 }
  0x2f   :  { %204 = vmatpush.msrb.mxu0 %v695_v0  ;;  %253 = vmatpush.msrb.mxu2 %v695_v0 }
  0x30   :  { %196 = vmatpush.msra.mxu3 %v867_v32  ;;  %149 = vmatpush.msra.mxu1 %v871_v33 }
  0x31   :  { %205 = vmatpush.msrb.mxu0 %v697_v1  ;;  %254 = vmatpush.msrb.mxu2 %v697_v1 }
  0x32   :  { %197 = vmatpush.msra.mxu3 %v871_v33  ;;  %231 = vmatpush.msrb.mxu1 %v711_v5 }
  0x33   :  { %206 = vmatpush.msrb.mxu0 %v701_v2  ;;  %255 = vmatpush.msrb.mxu2 %v701_v2 }
  0x34   :  { %280 = vmatpush.msrb.mxu3 %v711_v5  ;;  %232 = vmatpush.msrb.mxu1 %v713_v6 }
  0x35   :  { %207 = vmatpush.msrb.mxu0 %v705_v3  ;;  %256 = vmatpush.msrb.mxu2 %v705_v3 }
  0x36   :  { %281 = vmatpush.msrb.mxu3 %v713_v6  ;;  %233 = vmatpush.msrb.mxu1 %v719_v8 }
  0x37   :  { %208 = vmatpush.msrb.mxu0 %v709_v4  ;;  %257 = vmatpush.msrb.mxu2 %v709_v4 }
  0x38   :  { %282 = vmatpush.msrb.mxu3 %v719_v8  ;;  %234 = vmatpush.msrb.mxu1 %v727_v10 }
  0x39   :  { %209 = vmatpush.msrb.mxu0 %v717_v7  ;;  %258 = vmatpush.msrb.mxu2 %v717_v7 }
  0x3a   :  { %283 = vmatpush.msrb.mxu3 %v727_v10  ;;  %235 = vmatpush.msrb.mxu1 %v735_v12 }
  0x3b   :  { %210 = vmatpush.msrb.mxu0 %v725_v9  ;;  %259 = vmatpush.msrb.mxu2 %v725_v9 }
  0x3c   :  { %284 = vmatpush.msrb.mxu3 %v735_v12  ;;  %236 = vmatpush.msrb.mxu1 %v743_v14 }
  0x3d   :  { %211 = vmatpush.msrb.mxu0 %v733_v11  ;;  %260 = vmatpush.msrb.mxu2 %v733_v11 }
  0x3e   :  { %285 = vmatpush.msrb.mxu3 %v743_v14  ;;  %237 = vmatpush.msrb.mxu1 %v751_v16 }
  0x3f   :  { %212 = vmatpush.msrb.mxu0 %v741_v13  ;;  %261 = vmatpush.msrb.mxu2 %v741_v13 }
  0x40   :  { %286 = vmatpush.msrb.mxu3 %v751_v16  ;;  %238 = vmatpush.msrb.mxu1 %v759_v18 }
  0x41   :  { %213 = vmatpush.msrb.mxu0 %v749_v15  ;;  %262 = vmatpush.msrb.mxu2 %v749_v15 }
  0x42   :  { %287 = vmatpush.msrb.mxu3 %v759_v18  ;;  %239 = vmatpush.msrb.mxu1 %v772_v21 }
  0x43   :  { %214 = vmatpush.msrb.mxu0 %v757_v17  ;;  %263 = vmatpush.msrb.mxu2 %v757_v17 }
  0x44   :  { %288 = vmatpush.msrb.mxu3 %v772_v21  ;;  %240 = vmatpush.msrb.mxu1 %v849_v27 }
  0x45   :  { %215 = vmatpush.msrb.mxu0 %v770_v20  ;;  %264 = vmatpush.msrb.mxu2 %v770_v20 }
  0x46   :  { %289 = vmatpush.msrb.mxu3 %v849_v27  ;;  %241 = vmatpush.msrb.mxu1 %v853_v28 }
  0x47   :  { %216 = vmatpush.msrb.mxu0 %v778_v22  ;;  %265 = vmatpush.msrb.mxu2 %v778_v22 }
  0x48   :  { %290 = vmatpush.msrb.mxu3 %v853_v28  ;;  %242 = vmatpush.msrb.mxu1 %v857_v29 }
  0x49   :  { %217 = vmatpush.msrb.mxu0 %v785_v23  ;;  %266 = vmatpush.msrb.mxu2 %v785_v23 }
  0x4a   :  { %291 = vmatpush.msrb.mxu3 %v857_v29  ;;  %243 = vmatpush.msrb.mxu1 %v860_v30 }
  0x4b   :  { %218 = vmatpush.msrb.mxu0 %v790_v24  ;;  %267 = vmatpush.msrb.mxu2 %v790_v24 }
  0x4c   :  { %292 = vmatpush.msrb.mxu3 %v860_v30  ;;  %244 = vmatpush.msrb.mxu1 %v863_v31 }
  0x4d   :  { %219 = vmatpush.msrb.mxu0 %v794_v25  ;;  %268 = vmatpush.msrb.mxu2 %v794_v25 }
  0x4e   :  { %293 = vmatpush.msrb.mxu3 %v863_v31  ;;  %245 = vmatpush.msrb.mxu1 %v867_v32 }
  0x4f   :  { %302 = vmatpush.msra.mxu0 %v695_v0 }
  0x50   :  { %294 = vmatpush.msrb.mxu3 %v867_v32  ;;  %246 = vmatpush.msrb.mxu1 %v871_v33 }
  0x51   :  { %303 = vmatpush.msra.mxu0 %v697_v1 }
  0x52   :  { %295 = vmatpush.msrb.mxu3 %v871_v33 }
  0x53   :  { %304 = vmatpush.msra.mxu0 %v701_v2 }
  0x55   :  { %305 = vmatpush.msra.mxu0 %v705_v3 }
  0x57   :  { %306 = vmatpush.msra.mxu0 %v709_v4 }
  0x59   :  { %307 = vmatpush.msra.mxu0 %v717_v7 }
  0x5b   :  { %308 = vmatpush.msra.mxu0 %v725_v9 }
  0x5d   :  { %309 = vmatpush.msra.mxu0 %v733_v11 }
  0x5f   :  { %310 = vmatpush.msra.mxu0 %v741_v13 }
  0x61   :  { %311 = vmatpush.msra.mxu0 %v749_v15 }
  0x63   :  { %312 = vmatpush.msra.mxu0 %v757_v17 }
  0x65   :  { %313 = vmatpush.msra.mxu0 %v770_v20 }
  0x67   :  { %314 = vmatpush.msra.mxu0 %v778_v22 }
  0x69   :  { %315 = vmatpush.msra.mxu0 %v785_v23 }
  0x6b   :  { %316 = vmatpush.msra.mxu0 %v790_v24 }
  0x6d   :  { %317 = vmatpush.msra.mxu0 %v794_v25 }
  0xab   :  { %v125_v35 = vpop.f32.mrf.mxu0 }
  0xac   :  { %v129_v36 = vmul.f32 0.5, %v125_v35 }
  0xae   :  { %v130_v38 = vadd.f32 %v129_v36, %v128_v34 }
  0xb0   :  { %v132_v39 = vadd.f32 %v131_v37, %v130_v38 }
  0xb2   :  { %528 = vtanh.f32 %v132_v39  ;;  %v175_v43 = vmul.f32 0.5, %v132_v39 }
  0xb8   :  { %v529_v40 = vpop.eup %528 }
  0xb9   :  { %150 = vmatmul.f32.vlgmr.msra.gmra.mxu1 %v529_v40  ;;  %171 = vmatmul.f32.vlgmr.msra.gmra.mxu2 %v529_v40 }
  0xba   :  { %329 = vmatpush.msra.mxu1 %v711_v5  ;;  %351 = vmatpush.msra.mxu2 %v695_v0 }
  0xbc   :  { %330 = vmatpush.msra.mxu1 %v713_v6  ;;  %352 = vmatpush.msra.mxu2 %v697_v1 }
  0xbe   :  { %331 = vmatpush.msra.mxu1 %v719_v8  ;;  %353 = vmatpush.msra.mxu2 %v701_v2 }
  0xc0   :  { %332 = vmatpush.msra.mxu1 %v727_v10  ;;  %354 = vmatpush.msra.mxu2 %v705_v3 }
  0xc2   :  { %333 = vmatpush.msra.mxu1 %v735_v12  ;;  %355 = vmatpush.msra.mxu2 %v709_v4 }
  0xc4   :  { %334 = vmatpush.msra.mxu1 %v743_v14  ;;  %356 = vmatpush.msra.mxu2 %v717_v7 }
  0xc6   :  { %335 = vmatpush.msra.mxu1 %v751_v16  ;;  %357 = vmatpush.msra.mxu2 %v725_v9 }
  0xc8   :  { %336 = vmatpush.msra.mxu1 %v759_v18  ;;  %358 = vmatpush.msra.mxu2 %v733_v11 }
  0xca   :  { %337 = vmatpush.msra.mxu1 %v772_v21  ;;  %359 = vmatpush.msra.mxu2 %v741_v13 }
  0xcc   :  { %338 = vmatpush.msra.mxu1 %v849_v27  ;;  %360 = vmatpush.msra.mxu2 %v749_v15 }
  0xce   :  { %339 = vmatpush.msra.mxu1 %v853_v28  ;;  %361 = vmatpush.msra.mxu2 %v757_v17 }
  0xd0   :  { %340 = vmatpush.msra.mxu1 %v857_v29  ;;  %362 = vmatpush.msra.mxu2 %v770_v20 }
  0xd2   :  { %341 = vmatpush.msra.mxu1 %v860_v30  ;;  %363 = vmatpush.msra.mxu2 %v778_v22 }
  0xd4   :  { %342 = vmatpush.msra.mxu1 %v863_v31  ;;  %364 = vmatpush.msra.mxu2 %v785_v23 }
  0xd6   :  { %343 = vmatpush.msra.mxu1 %v867_v32  ;;  %365 = vmatpush.msra.mxu2 %v790_v24 }
  0xd8   :  { %344 = vmatpush.msra.mxu1 %v871_v33  ;;  %366 = vmatpush.msra.mxu2 %v794_v25 }
 0x136   :  { %v151_v41 = vpop.f32.mrf.mxu1 }
 0x137   :  { %154 = vst [vmem:[#allocation9] sm:$0xff] %v151_v41 }
 0x13c   :  { %v172_v42 = vpop.f32.mrf.mxu2 }
 0x13d   :  { %v176_v44 = vmul.f32 0.5, %v172_v42 }
 0x13f   :  { %v177_v46 = vadd.f32 %v176_v44, %v175_v43 }
 0x141   :  { %v180_v47 = vadd.f32 %v179_v45, %v177_v46 }
 0x143   :  { %530 = vtanh.f32 %v180_v47  ;;  %v224_v50 = vmul.f32 0.5, %v180_v47 }
 0x149   :  { %v531_v48 = vpop.eup %530 }
 0x14a   :  { %198 = vmatmul.f32.vlgmr.msra.gmra.mxu3 %v531_v48  ;;  %220 = vmatmul.f32.vlgmr.msrb.gmra.mxu0 %v531_v48 }
 0x14b   :  { %378 = vmatpush.msra.mxu3 %v711_v5  ;;  %400 = vmatpush.msrb.mxu0 %v695_v0 }
 0x14d   :  { %379 = vmatpush.msra.mxu3 %v713_v6  ;;  %401 = vmatpush.msrb.mxu0 %v697_v1 }
 0x14f   :  { %380 = vmatpush.msra.mxu3 %v719_v8  ;;  %402 = vmatpush.msrb.mxu0 %v701_v2 }
 0x151   :  { %381 = vmatpush.msra.mxu3 %v727_v10  ;;  %403 = vmatpush.msrb.mxu0 %v705_v3 }
 0x153   :  { %382 = vmatpush.msra.mxu3 %v735_v12  ;;  %404 = vmatpush.msrb.mxu0 %v709_v4 }
 0x155   :  { %383 = vmatpush.msra.mxu3 %v743_v14  ;;  %405 = vmatpush.msrb.mxu0 %v717_v7 }
 0x157   :  { %384 = vmatpush.msra.mxu3 %v751_v16  ;;  %406 = vmatpush.msrb.mxu0 %v725_v9 }
 0x159   :  { %385 = vmatpush.msra.mxu3 %v759_v18  ;;  %407 = vmatpush.msrb.mxu0 %v733_v11 }
 0x15b   :  { %386 = vmatpush.msra.mxu3 %v772_v21  ;;  %408 = vmatpush.msrb.mxu0 %v741_v13 }
 0x15d   :  { %387 = vmatpush.msra.mxu3 %v849_v27  ;;  %409 = vmatpush.msrb.mxu0 %v749_v15 }
 0x15f   :  { %388 = vmatpush.msra.mxu3 %v853_v28  ;;  %410 = vmatpush.msrb.mxu0 %v757_v17 }
 0x161   :  { %389 = vmatpush.msra.mxu3 %v857_v29  ;;  %411 = vmatpush.msrb.mxu0 %v770_v20 }
 0x163   :  { %390 = vmatpush.msra.mxu3 %v860_v30  ;;  %412 = vmatpush.msrb.mxu0 %v778_v22 }
 0x165   :  { %391 = vmatpush.msra.mxu3 %v863_v31  ;;  %413 = vmatpush.msrb.mxu0 %v785_v23 }
 0x167   :  { %392 = vmatpush.msra.mxu3 %v867_v32  ;;  %414 = vmatpush.msrb.mxu0 %v790_v24 }
 0x169   :  { %393 = vmatpush.msra.mxu3 %v871_v33  ;;  %415 = vmatpush.msrb.mxu0 %v794_v25 }
 0x1c7   :  { %v221_v49 = vpop.f32.mrf.mxu0 }
 0x1c8   :  { %v225_v51 = vmul.f32 0.5, %v221_v49 }
 0x1ca   :  { %v226_v53 = vadd.f32 %v225_v51, %v224_v50 }
 0x1cc   :  { %v229_v54 = vadd.f32 %v228_v52, %v226_v53 }
 0x1cd   :  { %v199_v55 = vpop.f32.mrf.mxu3 }
 0x1ce   :  { %532 = vtanh.f32 %v229_v54  ;;  %203 = vst [vmem:[#allocation9 + $0x8] sm:$0xff] %v199_v55  ;;  %v273_v59 = vmul.f32 0.5, %v229_v54 }
 0x1d4   :  { %v533_v56 = vpop.eup %532 }
 0x1d5   :  { %247 = vmatmul.f32.vlgmr.msrb.gmra.mxu1 %v533_v56  ;;  %269 = vmatmul.f32.vlgmr.msrb.gmra.mxu2 %v533_v56 }
 0x1d6   :  { %427 = vmatpush.msrb.mxu1 %v711_v5  ;;  %449 = vmatpush.msrb.mxu2 %v695_v0 }
 0x1d8   :  { %428 = vmatpush.msrb.mxu1 %v713_v6  ;;  %450 = vmatpush.msrb.mxu2 %v697_v1 }
 0x1da   :  { %429 = vmatpush.msrb.mxu1 %v719_v8  ;;  %451 = vmatpush.msrb.mxu2 %v701_v2 }
 0x1dc   :  { %430 = vmatpush.msrb.mxu1 %v727_v10  ;;  %452 = vmatpush.msrb.mxu2 %v705_v3 }
 0x1de   :  { %431 = vmatpush.msrb.mxu1 %v735_v12  ;;  %453 = vmatpush.msrb.mxu2 %v709_v4  ;;  %v326_v4 = vld [vmem:[#allocation3 + $0x20] sm:$0xff] }
 0x1e0   :  { %432 = vmatpush.msrb.mxu1 %v743_v14  ;;  %454 = vmatpush.msrb.mxu2 %v717_v7 }
 0x1e2   :  { %433 = vmatpush.msrb.mxu1 %v751_v16  ;;  %455 = vmatpush.msrb.mxu2 %v725_v9 }
 0x1e4   :  { %434 = vmatpush.msrb.mxu1 %v759_v18  ;;  %456 = vmatpush.msrb.mxu2 %v733_v11 }
 0x1e6   :  { %435 = vmatpush.msrb.mxu1 %v772_v21  ;;  %457 = vmatpush.msrb.mxu2 %v741_v13  ;;  %v375_v13 = vld [vmem:[#allocation3 + $0x28] sm:$0xff] }
 0x1e8   :  { %436 = vmatpush.msrb.mxu1 %v849_v27  ;;  %458 = vmatpush.msrb.mxu2 %v749_v15 }
 0x1ea   :  { %437 = vmatpush.msrb.mxu1 %v853_v28  ;;  %459 = vmatpush.msrb.mxu2 %v757_v17 }
 0x1ec   :  { %438 = vmatpush.msrb.mxu1 %v857_v29  ;;  %460 = vmatpush.msrb.mxu2 %v770_v20  ;;  %v424_v20 = vld [vmem:[#allocation3 + $0x30] sm:$0xff] }
 0x1ee   :  { %439 = vmatpush.msrb.mxu1 %v860_v30  ;;  %461 = vmatpush.msrb.mxu2 %v778_v22 }
 0x1f0   :  { %440 = vmatpush.msrb.mxu1 %v863_v31  ;;  %462 = vmatpush.msrb.mxu2 %v785_v23 }
 0x1f2   :  { %441 = vmatpush.msrb.mxu1 %v867_v32  ;;  %463 = vmatpush.msrb.mxu2 %v790_v24 }
 0x1f4   :  { %442 = vmatpush.msrb.mxu1 %v871_v33  ;;  %464 = vmatpush.msrb.mxu2 %v794_v25 }
 0x252   :  { %v248_v57 = vpop.f32.mrf.mxu1 }
 0x253   :  { %252 = vst [vmem:[#allocation9 + $0x10] sm:$0xff] %v248_v57 }
 0x258   :  { %v270_v58 = vpop.f32.mrf.mxu2 }
 0x259   :  { %v274_v60 = vmul.f32 0.5, %v270_v58 }
 0x25b   :  { %v275_v62 = vadd.f32 %v274_v60, %v273_v59 }
 0x25d   :  { %v278_v63 = vadd.f32 %v277_v61, %v275_v62 }
 0x25f   :  { %534 = vtanh.f32 %v278_v63  ;;  %v322_v2 = vmul.f32 0.5, %v278_v63 }
 0x265   :  { %v535_v0 = vpop.eup %534 }
 0x266   :  { %296 = vmatmul.f32.vlgmr.msrb.gmra.mxu3 %v535_v0  ;;  %318 = vmatmul.f32.vlgmr.msra.gmra.mxu0 %v535_v0 }
 0x267   :  { %476 = vmatpush.msrb.mxu3 %v711_v5 }
 0x269   :  { %477 = vmatpush.msrb.mxu3 %v713_v6 }
 0x26b   :  { %478 = vmatpush.msrb.mxu3 %v719_v8 }
 0x26d   :  { %479 = vmatpush.msrb.mxu3 %v727_v10 }
 0x26f   :  { %480 = vmatpush.msrb.mxu3 %v735_v12 }
 0x271   :  { %481 = vmatpush.msrb.mxu3 %v743_v14 }
 0x273   :  { %482 = vmatpush.msrb.mxu3 %v751_v16 }
 0x275   :  { %483 = vmatpush.msrb.mxu3 %v759_v18 }
 0x277   :  { %484 = vmatpush.msrb.mxu3 %v772_v21 }
 0x279   :  { %485 = vmatpush.msrb.mxu3 %v849_v27 }
 0x27b   :  { %486 = vmatpush.msrb.mxu3 %v853_v28 }
 0x27d   :  { %487 = vmatpush.msrb.mxu3 %v857_v29  ;;  %v473_v29 = vld [vmem:[#allocation3 + $0x38] sm:$0xff] }
 0x27f   :  { %488 = vmatpush.msrb.mxu3 %v860_v30 }
 0x281   :  { %489 = vmatpush.msrb.mxu3 %v863_v31 }
 0x283   :  { %490 = vmatpush.msrb.mxu3 %v867_v32 }
 0x285   :  { %491 = vmatpush.msrb.mxu3 %v871_v33 }
 0x2e3   :  { %v319_v1 = vpop.f32.mrf.mxu0 }
 0x2e4   :  { %v323_v3 = vmul.f32 0.5, %v319_v1 }
 0x2e6   :  { %v324_v5 = vadd.f32 %v323_v3, %v322_v2 }
 0x2e8   :  { %v327_v6 = vadd.f32 %v326_v4, %v324_v5 }
 0x2e9   :  { %v297_v7 = vpop.f32.mrf.mxu3 }
 0x2ea   :  { %536 = vtanh.f32 %v327_v6  ;;  %301 = vst [vmem:[#allocation9 + $0x18] sm:$0xff] %v297_v7  ;;  %v371_v11 = vmul.f32 0.5, %v327_v6 }
 0x2f0   :  { %v537_v8 = vpop.eup %536 }
 0x2f1   :  { %345 = vmatmul.f32.vlgmr.msra.gmra.mxu1 %v537_v8  ;;  %367 = vmatmul.f32.vlgmr.msra.gmra.mxu2 %v537_v8 }
 0x36e   :  { %v346_v9 = vpop.f32.mrf.mxu1 }
 0x36f   :  { %350 = vst [vmem:[#allocation9 + $0x20] sm:$0xff] %v346_v9 }
 0x374   :  { %v368_v10 = vpop.f32.mrf.mxu2 }
 0x375   :  { %v372_v12 = vmul.f32 0.5, %v368_v10 }
 0x377   :  { %v373_v14 = vadd.f32 %v372_v12, %v371_v11 }
 0x379   :  { %v376_v15 = vadd.f32 %v375_v13, %v373_v14 }
 0x37b   :  { %538 = vtanh.f32 %v376_v15  ;;  %v420_v18 = vmul.f32 0.5, %v376_v15 }
 0x381   :  { %v539_v16 = vpop.eup %538 }
 0x382   :  { %394 = vmatmul.f32.vlgmr.msra.gmra.mxu3 %v539_v16  ;;  %416 = vmatmul.f32.vlgmr.msrb.gmra.mxu0 %v539_v16 }
 0x3ff   :  { %v417_v17 = vpop.f32.mrf.mxu0 }
 0x400   :  { %v421_v19 = vmul.f32 0.5, %v417_v17 }
 0x402   :  { %v422_v21 = vadd.f32 %v421_v19, %v420_v18 }
 0x404   :  { %v425_v22 = vadd.f32 %v424_v20, %v422_v21 }
 0x405   :  { %v395_v23 = vpop.f32.mrf.mxu3 }
 0x406   :  { %540 = vtanh.f32 %v425_v22  ;;  %399 = vst [vmem:[#allocation9 + $0x28] sm:$0xff] %v395_v23  ;;  %v469_v27 = vmul.f32 0.5, %v425_v22 }
 0x40c   :  { %v541_v24 = vpop.eup %540 }
 0x40d   :  { %443 = vmatmul.f32.vlgmr.msrb.gmra.mxu1 %v541_v24  ;;  %465 = vmatmul.f32.vlgmr.msrb.gmra.mxu2 %v541_v24 }
 0x48a   :  { %v444_v25 = vpop.f32.mrf.mxu1 }
 0x48b   :  { %448 = vst [vmem:[#allocation9 + $0x30] sm:$0xff] %v444_v25 }
 0x490   :  { %v466_v26 = vpop.f32.mrf.mxu2 }
 0x491   :  { %v470_v28 = vmul.f32 0.5, %v466_v26 }
 0x493   :  { %v471_v30 = vadd.f32 %v470_v28, %v469_v27 }
 0x495   :  { %v474_v31 = vadd.f32 %v473_v29, %v471_v30 }
 0x497   :  { %542 = vtanh.f32 %v474_v31 }
 0x49d   :  { %v543_v32 = vpop.eup %542 }
 0x49e   :  { %492 = vmatmul.f32.vlgmr.msrb.gmra.mxu3 %v543_v32 }
 0x521   :  { %v493_v33 = vpop.f32.mrf.mxu3 }
 0x522   :  { %497 = vst [vmem:[#allocation9 + $0x38] sm:$0xff] %v493_v33 }
 0x523   :  { %511 = dma.vmem_to_hbm [thread:$0]  %s504_s5, 1024, %s506_s8, [#allocation5], %s647_s23, %s647_s23, %s648_s24  }
 0x524   :  { %644 = dma.done.wait [#allocation5], 1024  }
 0x525   :  { %645 = vsyncadd [#allocation5], 4294966272 }
 0x526   :  { %516 = vsyncpa [#allocation4], 1 }
 0x527   :  { %517 = vsyncpa [#allocation7], 1 }
 0x528   :  { %518 = vsyncpa [#allocation5], 1 }

</bundles_post_ra>
